<compile_context>
chip_gen: v6e
topology: v6e:2x2x1
jax: 0.10.0
libtpu: 0.0.40
codegen_flags: <defaults>
</compile_context>

<pallas_src>
import jax
import jax.numpy as jnp
from jax import lax
from jax.experimental import pallas as pl
from jax.experimental.pallas import tpu as pltpu

N_EMBD = 384      # matches the module's n_embd
BLOCK_SIZE = 256  # matches the module's block_size (upper bound on T)

_VMEM_BUDGET = 12 << 20  # conservative: fits v5e/v6e/v7x scoped defaults


def _attn_kernel(x_ref, w_ref, o_ref):
    # x_ref: (block_b, T, C) f32 ; w_ref: (C, 3H) bf16 (q cols pre-scaled)
    # o_ref: (block_b, T, H) f32
    bb, T, C = x_ref.shape
    H = o_ref.shape[-1]

    # ---- fused QKV projection: one MXU matmul (bb*T, C) @ (C, 3H) ----
    # cast x to bf16 in-kernel (input DMA stays f32 -> half the HBM traffic
    # of a wrapper-side cast); leading-dim reshape is free.
    x2d = x_ref[...].astype(jnp.bfloat16).reshape(bb * T, C)
    qkv = jnp.dot(x2d, w_ref[...],
                  preferred_element_type=jnp.float32)          # (bb*T, 3H) f32

    # 1/sqrt(H) already folded into the q weight columns.
    q = qkv[:, 0:H].astype(jnp.bfloat16).reshape(bb, T, H)
    k = qkv[:, H:2 * H].astype(jnp.bfloat16).reshape(bb, T, H)
    v = qkv[:, 2 * H:3 * H].astype(jnp.bfloat16).reshape(bb, T, H)

    # ---- scores: contract over H for both operands (no explicit k.T) ----
    s = jnp.einsum('bqh,bkh->bqk', q, k,
                   preferred_element_type=jnp.float32)          # (bb, T, T) f32

    # causal mask (tril): allow col <= row, else -inf
    row = lax.broadcasted_iota(jnp.int32, (T, T), 0)
    col = lax.broadcasted_iota(jnp.int32, (T, T), 1)
    s = jnp.where((col <= row)[None, :, :], s, -jnp.inf)

    # numerically-stable softmax along the last axis
    m = jnp.max(s, axis=-1, keepdims=True)
    p = jnp.exp(s - m)
    denom = jnp.sum(p, axis=-1, keepdims=True)
    p = p * pl.reciprocal(denom, approx=True)

    # ---- output: (bb, T, T) @ (bb, T, H), bf16 operands, f32 accumulation ----
    out = jnp.einsum('bqk,bkh->bqh', p.astype(jnp.bfloat16), v,
                     preferred_element_type=jnp.float32)        # (bb, T, H) f32

    # direct (block_b, T, H) store -- no in-kernel repacking, no wrapper unpack.
    o_ref[...] = out.astype(o_ref.dtype)


def make_fused_qkv_weight(wk_t, wq_t, wv_t):
    """Build the fused bf16 (C, 3H) weight ONCE (static weight, not per call).

    Column order: [q*H^-0.5 | k | v].  For H a power of 4 the scale is a power
    of two, so folding it into bf16 weights is bit-exact.
    """
    H = wq_t.shape[1]
    scale = H ** (-0.5)
    return jnp.concatenate([wq_t * scale, wk_t, wv_t], axis=1).astype(jnp.bfloat16)


def _vmem_estimate(bb, T, C, H):
    x_in = 2 * bb * T * C * 4            # double-buffered f32 input block
    o_out = 2 * bb * T * H * 4           # double-buffered f32 output block
    w = 2 * C * 3 * H * 2                # bf16 fused weight (double-buffered)
    live = bb * T * (C * 2               # x bf16 copy
                     + 3 * H * 4         # qkv f32
                     + 3 * H * 2         # q, k, v bf16
                     + 2 * T * 4         # scores + probs f32
                     + T * 2             # probs bf16
                     + H * 4)            # out f32
    return x_in + o_out + w + live


def _choose_block_b(B, T, C, H):
    # Largest batch-block that (a) divides B, (b) keeps >= 4 grid steps when B
    # allows (>= 2 steps per TensorCore on v7x so the x DMA is double-buffered),
    # and (c) fits the VMEM budget.
    for cand in (32, 16, 8, 4, 2, 1):
        if B % cand != 0:
            continue
        grid = B // cand
        if grid < 4 and B >= 4:
            continue
        if grid < 2 and B >= 2:
            continue
        if _vmem_estimate(cand, T, C, H) > _VMEM_BUDGET:
            continue
        return cand
    return 1


def self_attention(x, w_qkv, *, block_b=None):
    """x: (B, T, C) float32; w_qkv: (C, 3H) bfloat16 from make_fused_qkv_weight.

    Returns (B, T, H) float32.
    """
    B, T, C = x.shape
    H = w_qkv.shape[1] // 3
    assert C == N_EMBD and T <= BLOCK_SIZE
    assert T % 8 == 0, "T must be a multiple of 8 (sublane); pad if needed"
    # TODO(synk): arbitrary (non multiple-of-8) T would need padding handling.

    if block_b is None:
        block_b = _choose_block_b(B, T, C, H)
    assert B % block_b == 0
    nb = B // block_b

    # TODO(synk): pipeline_mode=pl.Buffered(1) on the weight spec would drop its
    # second VMEM buffer; left at the default for lowering safety.
    out = pl.pallas_call(
        _attn_kernel,
        out_shape=jax.ShapeDtypeStruct((B, T, H), jnp.float32),
        grid_spec=pltpu.PrefetchScalarGridSpec(
            num_scalar_prefetch=0,
            grid=(nb,),
            in_specs=[
                pl.BlockSpec((block_b, T, C), lambda i: (i, 0, 0)),
                pl.BlockSpec((C, 3 * H), lambda i: (0, 0)),
            ],
            out_specs=pl.BlockSpec((block_b, T, H), lambda i: (i, 0, 0)),
        ),
        compiler_params=pltpu.CompilerParams(
            dimension_semantics=("parallel",),
        ),
    )(x, w_qkv)
    return out


def _reference_f32(x, wk_t, wq_t, wv_t):
    # pure-JAX f32 reference matching the PyTorch forward exactly
    k = x @ wk_t
    q = x @ wq_t
    v = x @ wv_t
    wei = (q @ jnp.swapaxes(k, -2, -1)) * (k.shape[-1] ** -0.5)
    T = x.shape[1]
    tril = jnp.tril(jnp.ones((T, T), dtype=bool))
    wei = jnp.where(tril, wei, -jnp.inf)
    wei = jax.nn.softmax(wei, axis=-1)
    return wei @ v


def _reference_bf16(x, w_qkv, H):
    # reference mirroring the kernel's bf16-operand / f32-accumulate numerics
    bf = jnp.bfloat16
    qkv = jnp.einsum('btc,cn->btn', x.astype(bf), w_qkv,
                     preferred_element_type=jnp.float32)
    q = qkv[..., 0:H].astype(bf)            # scale already folded into w_qkv
    k = qkv[..., H:2 * H].astype(bf)
    v = qkv[..., 2 * H:3 * H].astype(bf)
    s = jnp.einsum('bqh,bkh->bqk', q, k, preferred_element_type=jnp.float32)
    T = x.shape[1]
    tril = jnp.tril(jnp.ones((T, T), dtype=bool))
    s = jnp.where(tril, s, -jnp.inf)
    p = jax.nn.softmax(s, axis=-1)
    return jnp.einsum('bqk,bkh->bqh', p.astype(bf), v,
                      preferred_element_type=jnp.float32)


if __name__ == "__main__":
    B, T, C = 8, 128, N_EMBD
    head_size = 64

    key = jax.random.PRNGKey(0)
    kx, kk, kq, kv = jax.random.split(key, 4)

    x = jax.random.normal(kx, (B, T, C), dtype=jnp.float32)
    # deterministic Linear weights (PyTorch shape (H, C)); store transposed (C, H)
    scale = 1.0 / jnp.sqrt(jnp.float32(C))
    wk_t = (jax.random.normal(kk, (head_size, C), dtype=jnp.float32) * scale).T
    wq_t = (jax.random.normal(kq, (head_size, C), dtype=jnp.float32) * scale).T
    wv_t = (jax.random.normal(kv, (head_size, C), dtype=jnp.float32) * scale).T

    # static fused weight: built once at init time, reused every call
    w_qkv = make_fused_qkv_weight(wk_t, wq_t, wv_t)
    w_qkv = jax.block_until_ready(w_qkv)

    out = self_attention(x, w_qkv)
    out = jax.block_until_ready(out)
    assert out.shape == (B, T, head_size)

    # tight check vs a reference with matching bf16-matmul numerics
    ref_bf16 = _reference_bf16(x, w_qkv, head_size)
    assert jnp.allclose(out, ref_bf16, atol=1e-2, rtol=1e-2)

    # loose sanity check vs the exact f32 PyTorch-equivalent forward
    ref_f32 = _reference_f32(x, wk_t, wq_t, wv_t)
    assert jnp.allclose(out, ref_f32, atol=2.5e-1, rtol=5e-2)

    print("KERNEL_OK")
</pallas_src>

<mosaic_0001>
module attributes {stable_mosaic.version = 11 : i64} {
  func.func @_attn_kernel(%arg0: i32, %arg1: memref<2x128x384xf32, #tpu.memory_space<vmem>>, %arg2: memref<384x192xbf16, #tpu.memory_space<vmem>>, %arg3: memref<2x128x64xf32, #tpu.memory_space<vmem>>) attributes {dimension_semantics = [#tpu.dimension_semantics<parallel>], iteration_bounds = array<i64: 4>, scalar_prefetch = 0 : i64, scratch_operands = 0 : i64, tpu.core_type = #tpu.core_type<tc>, window_params = [{transform_indices = @transform_0, window_bounds = array<i64: 2, 128, 384>}, {pipeline_mode = #tpu.pipeline_mode<synchronous>, transform_indices = @transform_1, window_bounds = array<i64: 384, 192>}, {transform_indices = @transform_2, window_bounds = array<i64: 2, 128, 64>}]} {
    %c0 = arith.constant 0 : index
    %c0_0 = arith.constant 0 : index
    %c0_1 = arith.constant 0 : index
    %0 = vector.load %arg1[%c0, %c0_0, %c0_1] : memref<2x128x384xf32, #tpu.memory_space<vmem>>, vector<2x128x384xf32>
    %1 = arith.truncf %0 : vector<2x128x384xf32> to vector<2x128x384xbf16>
    %2 = vector.shape_cast %1 : vector<2x128x384xbf16> to vector<256x384xbf16>
    %c0_2 = arith.constant 0 : index
    %c0_3 = arith.constant 0 : index
    %3 = vector.load %arg2[%c0_2, %c0_3] : memref<384x192xbf16, #tpu.memory_space<vmem>>, vector<384x192xbf16>
    %cst = arith.constant dense<0.000000e+00> : vector<256x192xf32>
    %4 = tpu.matmul %2, %3, %cst {dimension_numbers = #tpu.dot_dimension_numbers<[1], [0], [0], [1], [0, 0, 1, 1], [], []>} : vector<256x384xbf16>, vector<384x192xbf16>, vector<256x192xf32> -> vector<256x192xf32>
    %5 = vector.extract_strided_slice %4 {offsets = [0, 0], sizes = [256, 64], strides = [1, 1]} : vector<256x192xf32> to vector<256x64xf32>
    %6 = arith.truncf %5 : vector<256x64xf32> to vector<256x64xbf16>
    %7 = vector.shape_cast %6 : vector<256x64xbf16> to vector<2x128x64xbf16>
    %8 = vector.extract_strided_slice %4 {offsets = [0, 64], sizes = [256, 64], strides = [1, 1]} : vector<256x192xf32> to vector<256x64xf32>
    %9 = arith.truncf %8 : vector<256x64xf32> to vector<256x64xbf16>
    %10 = vector.shape_cast %9 : vector<256x64xbf16> to vector<2x128x64xbf16>
    %11 = vector.extract_strided_slice %4 {offsets = [0, 128], sizes = [256, 64], strides = [1, 1]} : vector<256x192xf32> to vector<256x64xf32>
    %12 = arith.truncf %11 : vector<256x64xf32> to vector<256x64xbf16>
    %13 = vector.shape_cast %12 : vector<256x64xbf16> to vector<2x128x64xbf16>
    "tpu.trace_start"() <{level = 10 : i32, message = "bqh,bkh->bqk"}> : () -> ()
    %cst_4 = arith.constant dense<0.000000e+00> : vector<2x128x128xf32>
    %14 = tpu.matmul %7, %10, %cst_4 {dimension_numbers = #tpu.dot_dimension_numbers<[2], [2], [1], [1], [0, 0, 0, 1, 1, 1], [0], [0]>} : vector<2x128x64xbf16>, vector<2x128x64xbf16>, vector<2x128x128xf32> -> vector<2x128x128xf32>
    "tpu.trace_stop"() : () -> ()
    %15 = tpu.iota {dimensions = array<i32: 0>} : vector<128x128xi32>
    %16 = tpu.iota {dimensions = array<i32: 1>} : vector<128x128xi32>
    %17 = arith.cmpi sle, %16, %15 : vector<128x128xi32>
    %18 = vector.shape_cast %17 : vector<128x128xi1> to vector<1x128x128xi1>
    %cst_5 = arith.constant 0xFF800000 : f32
    %19 = vector.shape_cast %18 : vector<1x128x128xi1> to vector<1x128x128xi1>
    %20 = vector.broadcast %19 : vector<1x128x128xi1> to vector<2x128x128xi1>
    %21 = vector.broadcast %cst_5 : f32 to vector<2x128x128xf32>
    %22 = arith.select %20, %14, %21 : vector<2x128x128xi1>, vector<2x128x128xf32>
    %cst_6 = arith.constant dense<0xFF800000> : vector<2x128xf32>
    %23 = vector.multi_reduction <maximumf>, %22, %cst_6 [2] : vector<2x128x128xf32> to vector<2x128xf32>
    %24 = vector.shape_cast %23 : vector<2x128xf32> to vector<2x128x1xf32>
    %25 = vector.broadcast %24 : vector<2x128x1xf32> to vector<2x128x128xf32>
    %26 = arith.subf %22, %25 : vector<2x128x128xf32>
    %27 = math.exp %26 : vector<2x128x128xf32>
    %cst_7 = arith.constant dense<0.000000e+00> : vector<2x128xf32>
    %28 = vector.multi_reduction <add>, %27, %cst_7 [2] : vector<2x128x128xf32> to vector<2x128xf32>
    %29 = vector.shape_cast %28 : vector<2x128xf32> to vector<2x128x1xf32>
    %30 = tpu.reciprocal %29 {approx = true} : vector<2x128x1xf32> -> vector<2x128x1xf32>
    %31 = vector.broadcast %30 : vector<2x128x1xf32> to vector<2x128x128xf32>
    %32 = arith.mulf %27, %31 : vector<2x128x128xf32>
    %33 = arith.truncf %32 : vector<2x128x128xf32> to vector<2x128x128xbf16>
    "tpu.trace_start"() <{level = 10 : i32, message = "bqk,bkh->bqh"}> : () -> ()
    %cst_8 = arith.constant dense<0.000000e+00> : vector<2x128x64xf32>
    %34 = tpu.matmul %33, %13, %cst_8 {dimension_numbers = #tpu.dot_dimension_numbers<[2], [1], [1], [2], [0, 0, 0, 1, 1, 2], [0], [0]>} : vector<2x128x128xbf16>, vector<2x128x64xbf16>, vector<2x128x64xf32> -> vector<2x128x64xf32>
    "tpu.trace_stop"() : () -> ()
    %c0_9 = arith.constant 0 : index
    %c0_10 = arith.constant 0 : index
    %c0_11 = arith.constant 0 : index
    %35 = vector.load %arg3[%c0_9, %c0_10, %c0_11] : memref<2x128x64xf32, #tpu.memory_space<vmem>>, vector<2x128x64xf32>
    tpu.vector_store %arg3[%c0_9, %c0_10, %c0_11], %34 {strides = array<i32>} : memref<2x128x64xf32, #tpu.memory_space<vmem>>, vector<2x128x64xf32>,
    return
  }
  func.func @transform_0(%arg0: i32) -> (i32, i32, i32) {
    %c0_i32 = arith.constant 0 : i32
    %c0_i32_0 = arith.constant 0 : i32
    %c0_i32_1 = arith.constant 0 : i32
    return %arg0, %c0_i32, %c0_i32_0 : i32, i32, i32
  }
  func.func @transform_1(%arg0: i32) -> (i32, i32) {
    %c0_i32 = arith.constant 0 : i32
    %c0_i32_0 = arith.constant 0 : i32
    %c0_i32_1 = arith.constant 0 : i32
    return %c0_i32, %c0_i32_0 : i32, i32
  }
  func.func @transform_2(%arg0: i32) -> (i32, i32, i32) {
    %c0_i32 = arith.constant 0 : i32
    %c0_i32_0 = arith.constant 0 : i32
    %c0_i32_1 = arith.constant 0 : i32
    return %arg0, %c0_i32, %c0_i32_0 : i32, i32, i32
  }
}

</mosaic_0001>

<bundles_post_ra>
// kernel: tpu_custom_call.1
= control target key start
LH: loop header
LB: loop body
LE: loop exit
PB: predicated region body
PF: predicated region fallthrough
CT: control target
= control target key end

     0   :  { %7 = vsyncpa [#allocation3], 0  ;;  %s3810_s0 = inlined_call_operand.hbm [shape: f32[8,128,384], index: 0, kind: input, shape index: {}]   ;;  %s3811_s1 = inlined_call_operand.vmem [shape: bf16[384,192], index: 1, kind: input, shape index: {}]   ;;  %s3812_s2 = inlined_call_operand.vmem [shape: f32[8,128,64], index: 2, kind: output, shape index: {}]  }
   0x1   :  { %9 = vsyncpa [#allocation3 + $0x1], 0  ;;  %s2689_s9 = smov 0   ;;  %s2691_s10 = smov 0  }
   0x2   :  { %s2693_s11 = smov 0   ;;  %s2695_s12 = smov 0  }
   0x3 LB: > { %s2057_s13 = sadd.s32 4294967295, %s2667_s12   ;;  %s2709_s14 = sadd.s32 1, %s2667_s12   ;;  %s2667_s12 = sphi %s2695_s12, %s3853_s12   ;;  %s2663_s11 = sphi %s2693_s11, %s3852_s11   ;;  %s2659_s10 = sphi %s2691_s10, %s3851_s10   ;;  %s2655_s9 = sphi %s2689_s9, %s3850_s9  }
   0x4   : > { %s19_s15 = ssub.s32 %s2667_s12, %s2709_s14  ;;  %s22_s16 = sadd.s32 1, %s2663_s11 }
   0x5   : > { %p20_p0 = scmp.eq.s32.totalorder %s19_s15, 0  ;;  %p29_p1 = scmp.ne.s32.totalorder %s2663_s11, %s2659_s10 }
   0x6   : > { %p30_p2 = scmp.eq.s32.totalorder %s2667_s12, 0  ;;  %p35_p3 = scmp.ne.s32.totalorder %s2659_s10, %s2655_s9 }
   0x7   : > { %s2719_s17 = scalar_select %p20_p0, %s2663_s11, %s22_s16  }
   0x8   : > { %p31_p4 = por %p30_p2, %p29_p1  ;;  %p36_p5 = scmp.eq.s32.totalorder %s2057_s13, 0 }
   0x9   : > { %p2368_p6 = scmp.lt.s32.totalorder %s2667_s12, 4  ;;  %s109_s19 = sand.u32 1, %s2663_s11  }
   0xa   : > { %p2724_p7 = por %p36_p5, %p35_p3  ;;  %s2359_s20 = smul.u32 768, %s109_s19 }
   0xb   : > { %s2360_s21 = smul.u32 12288, %s2667_s12  ;;  %p2730_p8 = pnand %p2368_p6, %p31_p4 }
   0xc   : > { %s3815_s18 = scalar_select %p2724_p7, 1, 0 }
   0xd   : > { %s2737_s25 = scalar_lea.hbm %s3810_s0, %s2360_s21  ;;  %s113_s26 = scalar_lea.vmem [#allocation2], %s2359_s20 }
   0xe   : > { %s121_s27 = sshll.u32 %s113_s26, 4  ;;  %s2742_s28 = scalar_lea.sflag [#allocation3], %s109_s19  ;;  %s2739_s27 = int_to_ptr.vmem [resolvable:$true] %s121_s27 }
   0xf   : > { %s2605_s29 = scalar_lea.hbm %s2737_s25, 12288  ;;  %p2607_p11 = pneg %p2730_p8 }
  0x10   : > { %p2606_p10 = scmp.ne.s32.totalorder %s2737_s25, %s2605_s29  ;;  %s2610_s4 = scalar_lea.hbm %s3810_s0, 49152 }
  0x11   : > { %p2611_p0 = scmp.lt.s32.totalorder %s2737_s25, %s3810_s0  ;;  %p2612_p1 = scmp.lt.s32.totalorder %s2610_s4, %s2605_s29 }
  0x12   : > { %p2608_p12 = pnand %p2607_p11, %p2606_p10 }
  0x13   : > { %p2613_p2 = por %p2612_p1, %p2611_p0 }
  0x14   : > { %p2609_p13 = pneg %p2608_p12 }
  0x16   : > { %p2614_p3 = pnand %p2613_p2, %p2609_p13 }
  0x18   : > { %2617 = shalt.err (!%p2614_p3)
}
  0x19   : > { %s2618_s7 = scalar_lea.vmem %s2739_s27, 12288  ;;  %s2669_s8 = smov [#allocation2]  }
  0x1a   : > { %p2619_p4 = scmp.ne.s32.totalorder %s2739_s27, %s2618_s7  ;;  %s2623_s9 = sshll.u32 %s2669_s8, 4  ;;  %s2624_s9 = int_to_ptr.vmem [resolvable:$false] %s2623_s9 }
  0x1b   : > { %s2625_s15 = scalar_lea.vmem %s2624_s9, 24576  ;;  %p2626_p10 = scmp.lt.s32.totalorder %s2739_s27, %s2624_s9 }
  0x1c   : > { %p2621_p5 = pnand %p2619_p4, %p2607_p11  ;;  %p2627_p12 = scmp.lt.s32.totalorder %s2625_s15, %s2618_s7 }
  0x1e   : > { %p2622_p6 = pneg %p2621_p5  ;;  %p2628_p9 = por %p2627_p12, %p2626_p10 }
  0x20   : > { %p2629_p7 = pnand %p2628_p9, %p2622_p6 }
  0x22   : > { %2632 = shalt.err (!%p2629_p7)
}
  0x23   : > { %s2670_s16 = smov 384   ;;  %s2671_s19 = smov 24  }
  0x24   : > { %2367 = dma.hbm_to_vmem [thread:$0]  (!%p2730_p8), %s2737_s25, 12288, %s2739_s27, %s2742_s28, %s2670_s16, %s2670_s16, %s2671_s19  }
  0x25   : > { %p129_p11 = scmp.lt.s32.totalorder %s2667_s12, 5  ;;  %p3817_p13 = scmp.ge.s32.totalorder %s2667_s12, 1 }
  0x27   : > { %p130_p0 = pnand %p3817_p13, %p129_p11 }
  0x28   : > { %s135_s20 = sand.u32 (!%p130_p0), 1, %s2659_s10   ;;  %p3818_p7 = scmp.ne.s32.totalorder (!%p130_p0), %s3815_s18, 0 }
  0x29   : > { %133 = sbr.rel (%p130_p0) target bundleno = 1356 (0x54c), region = 28  ;;  %s136_s23 = scalar_lea.sflag (!%p130_p0), [#allocation3], %s135_s20 }
  0x2a   : > { %s2361_s21 = smul.u32 (!%p130_p0), 768, %s135_s20 }
  0x2c   : > { %s2767_s24 = scalar_lea.vmem (!%p130_p0), [#allocation2], %s2361_s21 }
  0x2e   : > { %2650 = dma.done.wait (%p3818_p7), %s136_s23, 12288  }
  0x2f   : > { %2652 = vsyncadd (%p3818_p7), %s136_s23, 4294955008  ;;  %v2672_v0 = vmov 0   ;;  %v2405_v1 = vld [vmem:[%s3811_s1 + $0x74] ss:$8 sps:$4 sm:$0xff]   ;;  %v2407_v2 = vld [vmem:[%s3811_s1 + $0x70] ss:$8 sps:$4 sm:$0xff]  }
  0x30   : > { %827 = vmatprep.mubr.bf16.mxu1 %v2672_v0  ;;  %602 = vmatprep.subr.bf16.mxu0 %v2405_v1  ;;  %v2408_v3 = vld [vmem:[%s3811_s1 + $0x64] ss:$8 sps:$4 sm:$0xff]   ;;  %v2410_v4 = vld [vmem:[%s3811_s1 + $0x60] ss:$8 sps:$4 sm:$0xff]   ;;  %v2411_v5 = vld [vmem:[%s3811_s1 + $0x54] ss:$8 sps:$4 sm:$0xff]  }
  0x31   : > { %603 = vmatpush1.bf16.msra.mxu0 %v2407_v2  ;;  %v2413_v6 = vld [vmem:[%s3811_s1 + $0x50] ss:$8 sps:$4 sm:$0xff]   ;;  %v2414_v7 = vld [vmem:[%s3811_s1 + $0x44] ss:$8 sps:$4 sm:$0xff]   ;;  %v2426_v8 = vld [vmem:[%s3811_s1 + $0x174] ss:$8 sps:$4 sm:$0xff]  }
  0x32   : > { %604 = vmatprep.subr.bf16.mxu0 %v2408_v3  ;;  %v2428_v9 = vld [vmem:[%s3811_s1 + $0x170] ss:$8 sps:$4 sm:$0xff]   ;;  %v2416_v10 = vld [vmem:[%s3811_s1 + $0x40] ss:$8 sps:$4 sm:$0xff]   ;;  %v2417_v11 = vld [vmem:[%s3811_s1 + $0x34] ss:$8 sps:$4 sm:$0xff]   ;;  %795 = vmatprep.subr.bf16.mxu1 %v2426_v8 }
  0x33   : > { %v2432_v12 = vld [vmem:[%s3811_s1 + $0x164] ss:$8 sps:$4 sm:$0xff]   ;;  %796 = vmatpush1.bf16.msra.mxu1 %v2428_v9  ;;  %v2434_v13 = vld [vmem:[%s3811_s1 + $0x160] ss:$8 sps:$4 sm:$0xff]   ;;  %v2419_v14 = vld [vmem:[%s3811_s1 + $0x30] ss:$8 sps:$4 sm:$0xff]  }
  0x34   : > { %797 = vmatprep.subr.bf16.mxu1 %v2432_v12  ;;  %v2438_v15 = vld [vmem:[%s3811_s1 + $0x154] ss:$8 sps:$4 sm:$0xff]   ;;  %v2420_v16 = vld [vmem:[%s3811_s1 + $0x24] ss:$8 sps:$4 sm:$0xff]   ;;  %v2440_v17 = vld [vmem:[%s3811_s1 + $0x150] ss:$8 sps:$4 sm:$0xff]  }
  0x35   : > { %605 = vmatpush1.bf16.msra.mxu0 %v2410_v4  ;;  %v2444_v18 = vld [vmem:[%s3811_s1 + $0x144] ss:$8 sps:$4 sm:$0xff]   ;;  %v2422_v19 = vld [vmem:[%s3811_s1 + $0x20] ss:$8 sps:$4 sm:$0xff]   ;;  %v2423_v20 = vld [vmem:[%s3811_s1 + $0x14] ss:$8 sps:$4 sm:$0xff]  }
  0x36   : > { %606 = vmatprep.subr.bf16.mxu0 %v2411_v5  ;;  %v2446_v21 = vld [vmem:[%s3811_s1 + $0x140] ss:$8 sps:$4 sm:$0xff]   ;;  %v2450_v22 = vld [vmem:[%s3811_s1 + $0x134] ss:$8 sps:$4 sm:$0xff]   ;;  %v2425_v23 = vld [vmem:[%s3811_s1 + $0x10] ss:$8 sps:$4 sm:$0xff]  }
  0x37   : > { %798 = vmatpush1.bf16.msra.mxu1 %v2434_v13  ;;  %v2429_v24 = vld [vmem:[%s3811_s1 + $0x4] ss:$8 sps:$4 sm:$0xff]   ;;  %v2452_v25 = vld [vmem:[%s3811_s1 + $0x130] ss:$8 sps:$4 sm:$0xff]   ;;  %v2431_v27 = vld [vmem:[%s3811_s1] ss:$8 sps:$4 sm:$0xff]  }
  0x38   : > { %799 = vmatprep.subr.bf16.mxu1 %v2438_v15  ;;  %v2456_v26 = vld [vmem:[%s3811_s1 + $0x124] ss:$8 sps:$4 sm:$0xff]   ;;  %v2435_v28 = vld [vmem:[%s3811_s1 + $0xf4] ss:$8 sps:$4 sm:$0xff]   ;;  %v2458_v29 = vld [vmem:[%s3811_s1 + $0x120] ss:$8 sps:$4 sm:$0xff]  }
  0x39   : > { %607 = vmatpush1.bf16.msra.mxu0 %v2413_v6  ;;  %v2462_v30 = vld [vmem:[%s3811_s1 + $0x114] ss:$8 sps:$4 sm:$0xff]   ;;  %v2437_v31 = vld [vmem:[%s3811_s1 + $0xf0] ss:$8 sps:$4 sm:$0xff]   ;;  %v2441_v32 = vld [vmem:[%s3811_s1 + $0xe4] ss:$8 sps:$4 sm:$0xff]  }
  0x3a   : > { %608 = vmatprep.subr.bf16.mxu0 %v2414_v7  ;;  %v171_v33 = vld [vmem:[%s2767_s24 + $0x8] sm:$0xff]  ;;  %v2464_v34 = vld [vmem:[%s3811_s1 + $0x110] ss:$8 sps:$4 sm:$0xff]   ;;  %v174_v35 = vld [vmem:[%s2767_s24 + $0x20] sm:$0xff]  ;;  %vm3814_vm0 = vcmask 523264   ;;  %s2065_s7 = sshll.u32 %s2057_s13, 1 }
  0x3b   : > { %800 = vmatpush1.bf16.msra.mxu1 %v2440_v17  ;;  %v2468_v36 = vld [vmem:[%s3811_s1 + $0x104] ss:$8 sps:$4 sm:$0xff]   ;;  %v267_v37 = vpack.c.bf16 %v174_v35, %v171_v33  ;;  %v2443_v38 = vld [vmem:[%s3811_s1 + $0xe0] ss:$8 sps:$4 sm:$0xff]   ;;  %v2447_v39 = vld [vmem:[%s3811_s1 + $0xd4] ss:$8 sps:$4 sm:$0xff]  }
  0x3c   : > { %801 = vmatprep.subr.bf16.mxu1 %v2444_v18  ;;  %v2470_v40 = vld [vmem:[%s3811_s1 + $0x100] ss:$8 sps:$4 sm:$0xff]   ;;  %v172_v41 = vld [vmem:[%s2767_s24 + $0x10] sm:$0xff]  ;;  %v2453_v44 = vld [vmem:[%s3811_s1 + $0xc4] ss:$8 sps:$4 sm:$0xff]   ;;  %p163_p8 = scmp.lt.s32.totalorder %s2065_s7, 7 }
  0x3d   : > { %609 = vmatpush1.bf16.msra.mxu0 %v2416_v10  ;;  %634 = vmatprep.mubr.bf16.mxu0 %v267_v37  ;;  %v175_v42 = vld [vmem:[%s2767_s24 + $0x28] sm:$0xff]  ;;  %v2449_v43 = vld [vmem:[%s3811_s1 + $0xd0] ss:$8 sps:$4 sm:$0xff]   ;;  %v2459_v47 = vld [vmem:[%s3811_s1 + $0xb4] ss:$8 sps:$4 sm:$0xff]  }
  0x3e   : > { %610 = vmatprep.subr.bf16.mxu0 %v2417_v11  ;;  %v268_v45 = vpack.c.bf16 %v175_v42, %v172_v41  ;;  %v2455_v46 = vld [vmem:[%s3811_s1 + $0xc0] ss:$8 sps:$4 sm:$0xff]   ;;  %v181_v49 = vld [vmem:[%s2767_s24 + $0x58] sm:$0xff]  ;;  %v2465_v51 = vld [vmem:[%s3811_s1 + $0xa4] ss:$8 sps:$4 sm:$0xff]   ;;  %s3855_s7 = smov (!%p163_p8, %s2065_s7), 7 }
  0x3f   : > { %802 = vmatpush1.bf16.msra.mxu1 %v2446_v21  ;;  %v178_v48 = vld [vmem:[%s2767_s24 + $0x40] sm:$0xff]  ;;  %v2461_v50 = vld [vmem:[%s3811_s1 + $0xb0] ss:$8 sps:$4 sm:$0xff]   ;;  %v2471_v54 = vld [vmem:[%s3811_s1 + $0x94] ss:$8 sps:$4 sm:$0xff]   ;;  %s2134_s8 = sshll.u32 %s3855_s7, 7 }
  0x40   : > { %803 = vmatprep.subr.bf16.mxu1 %v2450_v22  ;;  %v271_v52 = vpack.c.bf16 %v181_v49, %v178_v48  ;;  %v2467_v53 = vld [vmem:[%s3811_s1 + $0xa0] ss:$8 sps:$4 sm:$0xff]   ;;  %v184_v55 = vld [vmem:[%s2767_s24 + $0x70] sm:$0xff]  ;;  %v2474_v58 = vld [vmem:[%s3811_s1 + $0x84] ss:$8 sps:$4 sm:$0xff]   ;;  %s3731_s16 = scalar_lea.vmem %s3812_s2, %s2134_s8 }
  0x41   : > { %611 = vmatpush1.bf16.msra.mxu0 %v2419_v14  ;;  %v187_v56 = vld [vmem:[%s2767_s24 + $0x88] sm:$0xff]  ;;  %v2473_v57 = vld [vmem:[%s3811_s1 + $0x90] ss:$8 sps:$4 sm:$0xff]   ;;  %v170_v61 = vld [vmem:[%s2767_s24] sm:$0xff] }
  0x42   : > { %612 = vmatprep.subr.bf16.mxu0 %v2420_v16  ;;  %v274_v59 = vpack.c.bf16 %v187_v56, %v184_v55  ;;  %v2476_v60 = vld [vmem:[%s3811_s1 + $0x80] ss:$8 sps:$4 sm:$0xff]   ;;  %v173_v62 = vld [vmem:[%s2767_s24 + $0x18] sm:$0xff]  ;;  %v180_v1 = vld [vmem:[%s2767_s24 + $0x50] sm:$0xff] }
  0x43   : > { %804 = vmatpush1.bf16.msra.mxu1 %v2452_v25  ;;  %v177_v63 = vld [vmem:[%s2767_s24 + $0x38] sm:$0xff]  ;;  %v190_v2 = vld [vmem:[%s2767_s24 + $0xa0] sm:$0xff]  ;;  %v266_v4 = vpack.c.bf16 %v173_v62, %v170_v61  ;;  %v176_v7 = vld [vmem:[%s2767_s24 + $0x30] sm:$0xff] }
  0x44   : > { %805 = vmatprep.subr.bf16.mxu1 %v2456_v26  ;;  %v193_v3 = vld [vmem:[%s2767_s24 + $0xb8] sm:$0xff]  ;;  %v270_v5 = vpack.c.bf16 %v180_v1, %v177_v63  ;;  %v179_v8 = vld [vmem:[%s2767_s24 + $0x48] sm:$0xff]  ;;  %v186_v10 = vld [vmem:[%s2767_s24 + $0x80] sm:$0xff] }
  0x45   : > { %613 = vmatpush1.bf16.msra.mxu0 %v2422_v19  ;;  %v277_v6 = vpack.c.bf16 %v193_v3, %v190_v2  ;;  %v183_v9 = vld [vmem:[%s2767_s24 + $0x68] sm:$0xff]  ;;  %v196_v11 = vld [vmem:[%s2767_s24 + $0xd0] sm:$0xff]  ;;  %v269_v13 = vpack.c.bf16 %v179_v8, %v176_v7  ;;  %v182_v16 = vld [vmem:[%s2767_s24 + $0x60] sm:$0xff] }
  0x46   : > { %614 = vmatprep.subr.bf16.mxu0 %v2423_v20  ;;  %v199_v12 = vld [vmem:[%s2767_s24 + $0xe8] sm:$0xff]  ;;  %v273_v14 = vpack.c.bf16 %v186_v10, %v183_v9  ;;  %v185_v17 = vld [vmem:[%s2767_s24 + $0x78] sm:$0xff]  ;;  %v192_v19 = vld [vmem:[%s2767_s24 + $0xb0] sm:$0xff] }
  0x47   : > { %806 = vmatpush1.bf16.msra.mxu1 %v2458_v29  ;;  %v280_v15 = vpack.c.bf16 %v199_v12, %v196_v11  ;;  %v189_v18 = vld [vmem:[%s2767_s24 + $0x98] sm:$0xff]  ;;  %v202_v20 = vld [vmem:[%s2767_s24 + $0x100] sm:$0xff]  ;;  %v272_v22 = vpack.c.bf16 %v185_v17, %v182_v16  ;;  %v188_v25 = vld [vmem:[%s2767_s24 + $0x90] sm:$0xff] }
  0x48   : > { %807 = vmatprep.subr.bf16.mxu1 %v2462_v30  ;;  %v205_v21 = vld [vmem:[%s2767_s24 + $0x118] sm:$0xff]  ;;  %v191_v26 = vld [vmem:[%s2767_s24 + $0xa8] sm:$0xff]  ;;  %v208_v29 = vld [vmem:[%s2767_s24 + $0x130] sm:$0xff] }
  0x49   : > { %615 = vmatpush1.bf16.msra.mxu0 %v2425_v23  ;;  %v276_v23 = vpack.c.bf16 %v192_v19, %v189_v18  ;;  %v211_v30 = vld [vmem:[%s2767_s24 + $0x148] sm:$0xff]  ;;  %v197_v35 = vld [vmem:[%s2767_s24 + $0xd8] sm:$0xff]  ;;  %v204_v37 = vld [vmem:[%s2767_s24 + $0x110] sm:$0xff] }
  0x4a   : > { %616 = vmatprep.subr.bf16.mxu0 %v2429_v24  ;;  %v283_v24 = vpack.c.bf16 %v205_v21, %v202_v20  ;;  %v286_v33 = vpack.c.bf16 %v211_v30, %v208_v29  ;;  %v223_v48 = vld [vmem:[%s2767_s24 + $0x1a8] sm:$0xff]  ;;  %v216_v55 = vld [vmem:[%s2767_s24 + $0x170] sm:$0xff]  ;;  %v226_v56 = vld [vmem:[%s2767_s24 + $0x1c0] sm:$0xff] }
  0x4b   : > { %808 = vmatpush1.bf16.msra.mxu1 %v2464_v34  ;;  %v194_v34 = vld [vmem:[%s2767_s24 + $0xc0] sm:$0xff]  ;;  %v212_v61 = vld [vmem:[%s2767_s24 + $0x150] sm:$0xff]  ;;  %v215_v62 = vld [vmem:[%s2767_s24 + $0x168] sm:$0xff] }
  0x4c   : > { %809 = vmatprep.subr.bf16.mxu1 %v2468_v36  ;;  %v201_v36 = vld [vmem:[%s2767_s24 + $0xf8] sm:$0xff]  ;;  %v219_v63 = vld [vmem:[%s2767_s24 + $0x188] sm:$0xff]  ;;  %v222_v1 = vld [vmem:[%s2767_s24 + $0x1a0] sm:$0xff] }
  0x4d   : > { %617 = vmatpush1.bf16.msra.mxu0 %v2431_v27  ;;  %v195_v27 = vld [vmem:[%s2767_s24 + $0xc8] sm:$0xff]  ;;  %v282_v41 = vpack.c.bf16 %v204_v37, %v201_v36  ;;  %v232_v2 = vld [vmem:[%s2767_s24 + $0x1f0] sm:$0xff]  ;;  %v218_v7 = vld [vmem:[%s2767_s24 + $0x180] sm:$0xff] }
  0x4e   : > { %618 = vmatprep.subr.bf16.mxu0 %v2435_v28  ;;  %v198_v28 = vld [vmem:[%s2767_s24 + $0xe0] sm:$0xff]  ;;  %v235_v3 = vld [vmem:[%s2767_s24 + $0x208] sm:$0xff]  ;;  %v221_v8 = vld [vmem:[%s2767_s24 + $0x198] sm:$0xff] }
  0x4f   : > { %810 = vmatpush1.bf16.msra.mxu1 %v2470_v40  ;;  %v278_v40 = vpack.c.bf16 %v197_v35, %v194_v34  ;;  %v225_v9 = vld [vmem:[%s2767_s24 + $0x1b8] sm:$0xff]  ;;  %v228_v10 = vld [vmem:[%s2767_s24 + $0x1d0] sm:$0xff]  ;;  %v238_v11 = vld [vmem:[%s2767_s24 + $0x220] sm:$0xff] }
  0x50   : > { %v241_v12 = vld [vmem:[%s2767_s24 + $0x238] sm:$0xff]  ;;  %v224_v16 = vld [vmem:[%s2767_s24 + $0x1b0] sm:$0xff]  ;;  %v227_v17 = vld [vmem:[%s2767_s24 + $0x1c8] sm:$0xff] }
  0x51   : > { %619 = vmatpush2.bf16.msra.mxu0 %v2437_v31  ;;  %v275_v31 = vpack.c.bf16 %v191_v26, %v188_v25  ;;  %v231_v18 = vld [vmem:[%s2767_s24 + $0x1e8] sm:$0xff]  ;;  %v234_v19 = vld [vmem:[%s2767_s24 + $0x200] sm:$0xff]  ;;  %v244_v20 = vld [vmem:[%s2767_s24 + $0x250] sm:$0xff] }
  0x52   : > { %620 = vmatprep.subr.bf16.mxu0 %v2441_v32  ;;  %828 = vmatmul.mubr.bf16.vlgmr.msra.gmra.mxu1 %v268_v45  ;;  %v279_v32 = vpack.c.bf16 %v198_v28, %v195_v27  ;;  %v207_v45 = vld [vmem:[%s2767_s24 + $0x128] sm:$0xff]  ;;  %v230_v25 = vld [vmem:[%s2767_s24 + $0x1e0] sm:$0xff]  ;;  %v233_v26 = vld [vmem:[%s2767_s24 + $0x1f8] sm:$0xff] }
  0x53   : > { %837 = vmatprep.mubr.bf16.mxu1 %v2672_v0  ;;  %v247_v21 = vld [vmem:[%s2767_s24 + $0x268] sm:$0xff]  ;;  %v237_v27 = vld [vmem:[%s2767_s24 + $0x218] sm:$0xff]  ;;  %v240_v28 = vld [vmem:[%s2767_s24 + $0x230] sm:$0xff] }
  0x54   : > { %v250_v29 = vld [vmem:[%s2767_s24 + $0x280] sm:$0xff]  ;;  %v253_v30 = vld [vmem:[%s2767_s24 + $0x298] sm:$0xff]  ;;  %v236_v34 = vld [vmem:[%s2767_s24 + $0x210] sm:$0xff] }
  0x55   : > { %621 = vmatpush2.bf16.msra.mxu0 %v2443_v38  ;;  %v214_v38 = vld [vmem:[%s2767_s24 + $0x160] sm:$0xff]  ;;  %v239_v35 = vld [vmem:[%s2767_s24 + $0x228] sm:$0xff] }
  0x56   : > { %622 = vmatprep.subr.bf16.mxu0 %v2447_v39  ;;  %v217_v39 = vld [vmem:[%s2767_s24 + $0x178] sm:$0xff]  ;;  %v243_v36 = vld [vmem:[%s2767_s24 + $0x248] sm:$0xff]  ;;  %v246_v37 = vld [vmem:[%s2767_s24 + $0x260] sm:$0xff] }
  0x57   : > { %v289_v42 = vpack.c.bf16 %v217_v39, %v214_v38  ;;  %v256_v38 = vld [vmem:[%s2767_s24 + $0x2b0] sm:$0xff]  ;;  %v259_v39 = vld [vmem:[%s2767_s24 + $0x2c8] sm:$0xff] }
  0x59   : > { %623 = vmatpush2.bf16.msra.mxu0 %v2449_v43  ;;  %v200_v43 = vld [vmem:[%s2767_s24 + $0xf0] sm:$0xff] }
  0x5a   : > { %624 = vmatprep.subr.bf16.mxu0 %v2453_v44  ;;  %838 = vmatmul.mubr.bf16.gmra.mxu1 %v271_v52  ;;  %v203_v44 = vld [vmem:[%s2767_s24 + $0x108] sm:$0xff]  ;;  %v206_v52 = vld [vmem:[%s2767_s24 + $0x120] sm:$0xff] }
  0x5b   : > { %847 = vmatprep.mubr.bf16.mxu1 %v2672_v0  ;;  %v281_v49 = vpack.c.bf16 %v203_v44, %v200_v43  ;;  %v242_v43 = vld [vmem:[%s2767_s24 + $0x240] sm:$0xff]  ;;  %v245_v44 = vld [vmem:[%s2767_s24 + $0x258] sm:$0xff] }
  0x5d   : > { %625 = vmatpush2.bf16.msra.mxu0 %v2455_v46  ;;  %v210_v46 = vld [vmem:[%s2767_s24 + $0x140] sm:$0xff] }
  0x5e   : > { %626 = vmatprep.subr.bf16.mxu0 %v2459_v47  ;;  %v220_v47 = vld [vmem:[%s2767_s24 + $0x190] sm:$0xff] }
  0x61   : > { %627 = vmatpush2.bf16.msra.mxu0 %v2461_v50  ;;  %v285_v50 = vpack.c.bf16 %v210_v46, %v207_v45  ;;  %v249_v45 = vld [vmem:[%s2767_s24 + $0x278] sm:$0xff]  ;;  %v252_v46 = vld [vmem:[%s2767_s24 + $0x290] sm:$0xff] }
  0x62   : > { %628 = vmatprep.subr.bf16.mxu0 %v2465_v51  ;;  %848 = vmatmul.mubr.bf16.gmra.mxu1 %v274_v59  ;;  %v292_v51 = vpack.c.bf16 %v223_v48, %v220_v47  ;;  %v262_v47 = vld [vmem:[%s2767_s24 + $0x2e0] sm:$0xff]  ;;  %v265_v48 = vld [vmem:[%s2767_s24 + $0x2f8] sm:$0xff] }
  0x63   : > { %857 = vmatprep.mubr.bf16.mxu1 %v2672_v0 }
  0x65   : > { %629 = vmatpush2.bf16.msra.mxu0 %v2467_v53  ;;  %v209_v53 = vld [vmem:[%s2767_s24 + $0x138] sm:$0xff] }
  0x66   : > { %630 = vmatprep.subr.bf16.mxu0 %v2471_v54  ;;  %v213_v54 = vld [vmem:[%s2767_s24 + $0x158] sm:$0xff] }
  0x67   : > { %v288_v59 = vpack.c.bf16 %v216_v55, %v213_v54  ;;  %v255_v54 = vld [vmem:[%s2767_s24 + $0x2a8] sm:$0xff]  ;;  %v258_v55 = vld [vmem:[%s2767_s24 + $0x2c0] sm:$0xff] }
  0x69   : > { %631 = vmatpush2.bf16.msra.mxu0 %v2473_v57  ;;  %v229_v57 = vld [vmem:[%s2767_s24 + $0x1d8] sm:$0xff] }
  0x6a   : > { %632 = vmatprep.subr.bf16.mxu0 %v2474_v58  ;;  %858 = vmatmul.mubr.bf16.gmra.mxu1 %v277_v6  ;;  %v284_v58 = vpack.c.bf16 %v209_v53, %v206_v52  ;;  %v298_v6 = vpack.c.bf16 %v235_v3, %v232_v2  ;;  %v248_v52 = vld [vmem:[%s2767_s24 + $0x270] sm:$0xff]  ;;  %v251_v53 = vld [vmem:[%s2767_s24 + $0x288] sm:$0xff] }
  0x6b   : > { %867 = vmatprep.mubr.bf16.mxu1 %v2672_v0 }
  0x6d   : > { %633 = vmatpush2.bf16.msra.mxu0 %v2476_v60  ;;  %v295_v60 = vpack.c.bf16 %v229_v57, %v226_v56  ;;  %v305_v56 = vpack.c.bf16 %v251_v53, %v248_v52  ;;  %v254_v57 = vld [vmem:[%s2767_s24 + $0x2a0] sm:$0xff] }
  0x70   : > { %635 = vmatmul.mubr.bf16.vlgmr.msra.gmra.mxu0 %v266_v4  ;;  %v287_v4 = vpack.c.bf16 %v215_v62, %v212_v61 }
  0x71   : > { %644 = vmatprep.mubr.bf16.mxu0 %v270_v5  ;;  %v291_v5 = vpack.c.bf16 %v222_v1, %v219_v63  ;;  %v260_v63 = vld [vmem:[%s2767_s24 + $0x2d0] sm:$0xff]  ;;  %v263_v1 = vld [vmem:[%s2767_s24 + $0x2e8] sm:$0xff] }
  0x72   : > { %868 = vmatmul.mubr.bf16.gmra.mxu1 %v280_v15  ;;  %v301_v15 = vpack.c.bf16 %v241_v12, %v238_v11  ;;  %v311_v2 = vpack.c.bf16 %v263_v1, %v260_v63 }
  0x73   : > { %877 = vmatprep.mubr.bf16.mxu1 %v2672_v0 }
  0x78   : > { %645 = vmatmul.mubr.bf16.gmra.mxu0 %v269_v13  ;;  %v290_v13 = vpack.c.bf16 %v221_v8, %v218_v7 }
  0x79   : > { %654 = vmatprep.mubr.bf16.mxu0 %v273_v14  ;;  %v294_v14 = vpack.c.bf16 %v228_v10, %v225_v9 }
  0x7a   : > { %878 = vmatmul.mubr.bf16.gmra.mxu1 %v283_v24  ;;  %v304_v24 = vpack.c.bf16 %v247_v21, %v244_v20 }
  0x7b   : > { %887 = vmatprep.mubr.bf16.mxu1 %v2672_v0 }
  0x80   : > { %655 = vmatmul.mubr.bf16.gmra.mxu0 %v272_v22  ;;  %v293_v22 = vpack.c.bf16 %v227_v17, %v224_v16 }
  0x81   : > { %664 = vmatprep.mubr.bf16.mxu0 %v276_v23  ;;  %v297_v23 = vpack.c.bf16 %v234_v19, %v231_v18 }
  0x82   : > { %888 = vmatmul.mubr.bf16.gmra.mxu1 %v286_v33  ;;  %v307_v33 = vpack.c.bf16 %v253_v30, %v250_v29 }
  0x83   : > { %897 = vmatprep.mubr.bf16.mxu1 %v2672_v0 }
  0x88   : > { %665 = vmatmul.mubr.bf16.gmra.mxu0 %v275_v31  ;;  %v296_v31 = vpack.c.bf16 %v233_v26, %v230_v25 }
  0x89   : > { %674 = vmatprep.mubr.bf16.mxu0 %v279_v32  ;;  %v300_v32 = vpack.c.bf16 %v240_v28, %v237_v27 }
  0x8a   : > { %898 = vmatmul.mubr.bf16.gmra.mxu1 %v289_v42  ;;  %v310_v42 = vpack.c.bf16 %v259_v39, %v256_v38 }
  0x8b   : > { %907 = vmatprep.mubr.bf16.mxu1 %v2672_v0 }
  0x90   : > { %675 = vmatmul.mubr.bf16.gmra.mxu0 %v278_v40  ;;  %v299_v40 = vpack.c.bf16 %v239_v35, %v236_v34 }
  0x91   : > { %684 = vmatprep.mubr.bf16.mxu0 %v282_v41  ;;  %v303_v41 = vpack.c.bf16 %v246_v37, %v243_v36 }
  0x92   : > { %908 = vmatmul.mubr.bf16.gmra.mxu1 %v292_v51  ;;  %v313_v51 = vpack.c.bf16 %v265_v48, %v262_v47 }
  0x93   : > { %917 = vmatprep.mubr.bf16.mxu1 %v2672_v0 }
  0x98   : > { %685 = vmatmul.mubr.bf16.gmra.mxu0 %v281_v49  ;;  %v302_v49 = vpack.c.bf16 %v245_v44, %v242_v43 }
  0x99   : > { %694 = vmatprep.mubr.bf16.mxu0 %v285_v50  ;;  %v306_v50 = vpack.c.bf16 %v252_v46, %v249_v45 }
  0x9a   : > { %918 = vmatmul.mubr.bf16.gmra.mxu1 %v295_v60  ;;  %v264_v60 = vld [vmem:[%s2767_s24 + $0x2f0] sm:$0xff] }
  0x9b   : > { %927 = vmatprep.mubr.bf16.mxu1 %v2672_v0 }
  0xa0   : > { %695 = vmatmul.mubr.bf16.gmra.mxu0 %v284_v58  ;;  %v257_v58 = vld [vmem:[%s2767_s24 + $0x2b8] sm:$0xff] }
  0xa1   : > { %704 = vmatprep.mubr.bf16.mxu0 %v288_v59  ;;  %v261_v59 = vld [vmem:[%s2767_s24 + $0x2d8] sm:$0xff]  ;;  %v308_v61 = vpack.c.bf16 %v257_v58, %v254_v57  ;;  %s2673_s24 = smov 64  }
  0xa2   : > { %928 = vmatmul.mubr.bf16.gmra.mxu1 %v298_v6  ;;  %v312_v62 = vpack.c.bf16 %v264_v60, %v261_v59 }
  0xa3   : > { %937 = vmatprep.mubr.bf16.mxu1 %v2672_v0 }
  0xa8   : > { %705 = vmatmul.mubr.bf16.gmra.mxu0 %v287_v4 }
  0xa9   : > { %714 = vmatprep.mubr.bf16.mxu0 %v291_v5 }
  0xaa   : > { %938 = vmatmul.mubr.bf16.gmra.mxu1 %v301_v15 }
  0xab   : > { %947 = vmatprep.mubr.bf16.mxu1 %v2672_v0 }
  0xb0   : > { %715 = vmatmul.mubr.bf16.gmra.mxu0 %v290_v13 }
  0xb1   : > { %724 = vmatprep.mubr.bf16.mxu0 %v294_v14 }
  0xb2   : > { %948 = vmatmul.mubr.bf16.gmra.mxu1 %v304_v24 }
  0xb3   : > { %957 = vmatprep.mubr.bf16.mxu1 %v2672_v0 }
  0xb8   : > { %725 = vmatmul.mubr.bf16.gmra.mxu0 %v293_v22 }
  0xb9   : > { %734 = vmatprep.mubr.bf16.mxu0 %v297_v23 }
  0xba   : > { %958 = vmatmul.mubr.bf16.gmra.mxu1 %v307_v33 }
  0xbb   : > { %967 = vmatprep.mubr.bf16.mxu1 %v2672_v0 }
  0xc0   : > { %735 = vmatmul.mubr.bf16.gmra.mxu0 %v296_v31 }
  0xc1   : > { %744 = vmatprep.mubr.bf16.mxu0 %v300_v32 }
  0xc2   : > { %968 = vmatmul.mubr.bf16.gmra.mxu1 %v310_v42 }
  0xc3   : > { %977 = vmatprep.mubr.bf16.mxu1 %v2672_v0  ;;  %v309_v0 = vpack.c.bf16 %v258_v55, %v255_v54 }
  0xc8   : > { %745 = vmatmul.mubr.bf16.gmra.mxu0 %v299_v40 }
  0xc9   : > { %754 = vmatprep.mubr.bf16.mxu0 %v303_v41 }
  0xca   : > { %978 = vmatmul.mubr.bf16.gmra.mxu1 %v313_v51 }
  0xd0   : > { %755 = vmatmul.mubr.bf16.gmra.mxu0 %v302_v49 }
  0xd1   : > { %764 = vmatprep.mubr.bf16.mxu0 %v306_v50 }
  0xd8   : > { %765 = vmatmul.mubr.bf16.gmra.mxu0 %v305_v56 }
  0xd9   : > { %774 = vmatprep.mubr.bf16.mxu0 %v309_v0 }
  0xe0   : > { %775 = vmatmul.mubr.bf16.gmra.mxu0 %v308_v61 }
  0xe1   : > { %784 = vmatprep.mubr.bf16.mxu0 %v312_v62 }
  0xe8   : > { %785 = vmatmul.mubr.bf16.gmra.mxu0 %v311_v2 }
 0x112   : > { %v829_v3 = vpop.f32.mrf.mxu1 }
 0x114   : > { %v831_v4 = vpop.f32.mrf.mxu1 }
 0x116   : > { %v833_v5 = vpop.f32.mrf.mxu1 }
 0x118   : > { %v835_v6 = vpop.f32.mrf.mxu1 }
 0x11a   : > { %v839_v7 = vpop.f32.mrf.mxu1 }
 0x11c   : > { %v841_v8 = vpop.f32.mrf.mxu1 }
 0x11e   : > { %v843_v9 = vpop.f32.mrf.mxu1 }
 0x120   : > { %v845_v10 = vpop.f32.mrf.mxu1 }
 0x122   : > { %v3029_v11 = vpop.f32.mrf.mxu1 }
 0x124   : > { %v851_v12 = vpop.f32.mrf.mxu1 }
 0x126   : > { %v3031_v13 = vpop.f32.mrf.mxu1 }
 0x128   : > { %v855_v15 = vpop.f32.mrf.mxu1 }
 0x12a   : > { %v3033_v17 = vpop.f32.mrf.mxu1 }
 0x12c   : > { %v861_v20 = vpop.f32.mrf.mxu1 }
 0x12e   : > { %v3035_v24 = vpop.f32.mrf.mxu1 }
 0x130   : > { %v636_v14 = vpop.f32.mrf.mxu0  ;;  %v865_v28 = vpop.f32.mrf.mxu1 }
 0x131   : > { %v830_v21 = vadd.f32 %v829_v3, %v636_v14 }
 0x132   : > { %v638_v16 = vpop.f32.mrf.mxu0  ;;  %v3043_v32 = vpop.f32.mrf.mxu1 }
 0x133   : > { %v832_v18 = vadd.f32 %v831_v4, %v638_v16 }
 0x134   : > { %v640_v19 = vpop.f32.mrf.mxu0  ;;  %v871_v35 = vpop.f32.mrf.mxu1 }
 0x135   : > { %v834_v22 = vadd.f32 %v833_v5, %v640_v19 }
 0x136   : > { %v642_v23 = vpop.f32.mrf.mxu0  ;;  %v3045_v38 = vpop.f32.mrf.mxu1 }
 0x137   : > { %v3037_v25 = vpack.c.bf16 %v834_v22, %v830_v21  ;;  %v836_v26 = vadd.f32 %v835_v6, %v642_v23 }
 0x138   : > { %v646_v27 = vpop.f32.mrf.mxu0  ;;  %v875_v42 = vpop.f32.mrf.mxu1 }
 0x139   : > { %v3039_v29 = vpack.c.bf16 %v836_v26, %v832_v18  ;;  %v840_v30 = vadd.f32 %v839_v7, %v646_v27  ;;  %2215 = vmatprep.mubr.msk.bf16.mxu1 %vm3814_vm0, %v3037_v25 }
 0x13a   : > { %v648_v31 = vpop.f32.mrf.mxu0  ;;  %v879_v45 = vpop.f32.mrf.mxu1 }
 0x13b   : > { %v842_v33 = vadd.f32 %v841_v8, %v648_v31 }
 0x13c   : > { %v650_v34 = vpop.f32.mrf.mxu0  ;;  %v881_v48 = vpop.f32.mrf.mxu1 }
 0x13d   : > { %v844_v36 = vadd.f32 %v843_v9, %v650_v34 }
 0x13e   : > { %v652_v37 = vpop.f32.mrf.mxu0  ;;  %v883_v50 = vpop.f32.mrf.mxu1 }
 0x13f   : > { %v3047_v39 = vpack.c.bf16 %v844_v36, %v840_v30  ;;  %v846_v40 = vadd.f32 %v845_v10, %v652_v37 }
 0x140   : > { %v3049_v41 = vpop.f32.mrf.mxu0  ;;  %v885_v53 = vpop.f32.mrf.mxu1 }
 0x141   : > { %v3051_v43 = vpack.c.bf16 %v846_v40, %v842_v33 }
 0x142   : > { %v658_v44 = vpop.f32.mrf.mxu0  ;;  %v889_v56 = vpop.f32.mrf.mxu1 }
 0x143   : > { %v852_v46 = vadd.f32 %v851_v12, %v658_v44 }
 0x144   : > { %v3053_v47 = vpop.f32.mrf.mxu0  ;;  %v891_v58 = vpop.f32.mrf.mxu1 }
 0x146   : > { %v662_v49 = vpop.f32.mrf.mxu0  ;;  %v893_v60 = vpop.f32.mrf.mxu1 }
 0x147   : > { %v856_v51 = vadd.f32 %v855_v15, %v662_v49 }
 0x148   : > { %v3055_v52 = vpop.f32.mrf.mxu0  ;;  %v895_v63 = vpop.f32.mrf.mxu1 }
 0x149   : > { %v3057_v54 = vpack.c.bf16 %v856_v51, %v852_v46 }
 0x14a   : > { %v668_v55 = vpop.f32.mrf.mxu0  ;;  %v899_v3 = vpop.f32.mrf.mxu1 }
 0x14b   : > { %v862_v0 = vadd.f32 %v861_v20, %v668_v55 }
 0x14c   : > { %v3059_v57 = vpop.f32.mrf.mxu0  ;;  %v901_v6 = vpop.f32.mrf.mxu1 }
 0x14e   : > { %v672_v59 = vpop.f32.mrf.mxu0  ;;  %v903_v8 = vpop.f32.mrf.mxu1 }
 0x14f   : > { %v866_v61 = vadd.f32 %v865_v28, %v672_v59 }
 0x150   : > { %v3061_v62 = vpop.f32.mrf.mxu0  ;;  %v905_v12 = vpop.f32.mrf.mxu1 }
 0x151   : > { %v3063_v1 = vpack.c.bf16 %v866_v61, %v862_v0 }
 0x152   : > { %v678_v2 = vpop.f32.mrf.mxu0  ;;  %v909_v16 = vpop.f32.mrf.mxu1 }
 0x153   : > { %v872_v4 = vadd.f32 %v871_v35, %v678_v2 }
 0x154   : > { %v680_v5 = vpop.f32.mrf.mxu0  ;;  %v911_v20 = vpop.f32.mrf.mxu1 }
 0x156   : > { %v682_v7 = vpop.f32.mrf.mxu0  ;;  %v913_v26 = vpop.f32.mrf.mxu1 }
 0x157   : > { %v876_v9 = vadd.f32 %v875_v42, %v682_v7 }
 0x158   : > { %v686_v10 = vpop.f32.mrf.mxu0  ;;  %v915_v31 = vpop.f32.mrf.mxu1 }
 0x159   : > { %v3065_v14 = vpack.c.bf16 %v876_v9, %v872_v4  ;;  %v880_v21 = vadd.f32 %v879_v45, %v686_v10 }
 0x15a   : > { %v688_v15 = vpop.f32.mrf.mxu0  ;;  %v3073_v35 = vpop.f32.mrf.mxu1 }
 0x15b   : > { %v882_v18 = vadd.f32 %v881_v48, %v688_v15 }
 0x15c   : > { %v690_v19 = vpop.f32.mrf.mxu0  ;;  %v921_v40 = vpop.f32.mrf.mxu1 }
 0x15d   : > { %v884_v22 = vadd.f32 %v883_v50, %v690_v19 }
 0x15e   : > { %v692_v23 = vpop.f32.mrf.mxu0  ;;  %v3075_v44 = vpop.f32.mrf.mxu1 }
 0x15f   : > { %v886_v27 = vadd.f32 %v885_v53, %v692_v23  ;;  %v3067_v28 = vpack.c.bf16 %v884_v22, %v880_v21  ;;  %v870_v22 = vadd.f32 %v3043_v32, %v3061_v62  ;;  %v860_v32 = vadd.f32 %v3033_v17, %v3055_v52 }
 0x160   : > { %v696_v30 = vpop.f32.mrf.mxu0  ;;  %v925_v48 = vpop.f32.mrf.mxu1  ;;  %v850_v17 = vadd.f32 %v3029_v11, %v3049_v41 }
 0x161   : > { %v3069_v33 = vpack.c.bf16 %v886_v27, %v882_v18  ;;  %1038 = vrot.lane.b32.xlu1 %v3067_v28, %s2673_s24  ;;  %v890_v15 = vadd.f32 %v889_v56, %v696_v30 }
 0x162   : > { %v698_v34 = vpop.f32.mrf.mxu0  ;;  %v929_v51 = vpop.f32.mrf.mxu1 }
 0x163   : > { %v892_v36 = vadd.f32 %v891_v58, %v698_v34  ;;  %v864_v34 = vadd.f32 %v3035_v24, %v3059_v57  ;;  %v854_v57 = vadd.f32 %v3031_v13, %v3053_v47 }
 0x164   : > { %v700_v37 = vpop.f32.mrf.mxu0  ;;  %v931_v0 = vpop.f32.mrf.mxu1 }
 0x165   : > { %v894_v58 = vadd.f32 %v893_v60, %v700_v37 }
 0x166   : > { %v702_v42 = vpop.f32.mrf.mxu0  ;;  %v3079_v4 = vpop.f32.mrf.mxu1 }
 0x167   : > { %v896_v45 = vadd.f32 %v895_v63, %v702_v42 }
 0x168   : > { %v706_v46 = vpop.f32.mrf.mxu0  ;;  %v935_v63 = vpop.f32.mrf.mxu1 }
 0x169   : > { %v3077_v49 = vpack.c.bf16 %v896_v45, %v892_v36  ;;  %v900_v59 = vadd.f32 %v899_v3, %v706_v46  ;;  %v874_v3 = vadd.f32 %v3045_v38, %v680_v5 }
 0x16a   : > { %v708_v50 = vpop.f32.mrf.mxu0  ;;  %v3087_v19 = vpop.f32.mrf.mxu1 }
 0x16b   : > { %v902_v53 = vadd.f32 %v901_v6, %v708_v50  ;;  %v3100_v38 = vpack.c.bf16 %v874_v3, %v870_v22  ;;  %v3124_v50 = vpack.c.bf16 %v854_v57, %v850_v17 }
 0x16c   : > { %v710_v55 = vpop.f32.mrf.mxu0 }
 0x16d   : > { %v904_v61 = vadd.f32 %v903_v8, %v710_v55  ;;  %v3090_v8 = vpack.c.bf16 %v894_v58, %v890_v15 }
 0x16e   : > { %v712_v2 = vpop.f32.mrf.mxu0 }
 0x16f   : > { %v906_v7 = vadd.f32 %v905_v12, %v712_v2  ;;  %v3081_v9 = vpack.c.bf16 %v904_v61, %v900_v59  ;;  %v941_v12 = vpop.f32.mrf.mxu1 }
 0x170   : > { %v716_v10 = vpop.f32.mrf.mxu0 }
 0x171   : > { %v3083_v18 = vpack.c.bf16 %v906_v7, %v902_v53  ;;  %1042 = vrot.lane.b32.xlu0 %v3081_v9, %s2673_s24  ;;  %v910_v23 = vadd.f32 %v909_v16, %v716_v10  ;;  %v3096_v30 = vpop.f32.mrf.mxu1 }
 0x172   : > { %v718_v6 = vpop.f32.mrf.mxu0 }
 0x173   : > { %v912_v21 = vadd.f32 %v911_v20, %v718_v6  ;;  %v945_v37 = vpop.f32.mrf.mxu1 }
 0x174   : > { %v720_v60 = vpop.f32.mrf.mxu0 }
 0x175   : > { %v914_v56 = vadd.f32 %v913_v26, %v720_v60  ;;  %1040 = vrot.lane.b32.xlu0 %v3090_v8, %s2673_s24  ;;  %v3112_v24 = vpop.f32.mrf.mxu1  ;;  %v3116_v26 = vpack.c.bf16 %v864_v34, %v860_v32 }
 0x176   : > { %v722_v27 = vpop.f32.mrf.mxu0 }
 0x177   : > { %v3102_v5 = vpack.c.bf16 %v914_v56, %v910_v23  ;;  %v916_v20 = vadd.f32 %v915_v31, %v722_v27  ;;  %v951_v45 = vpop.f32.mrf.mxu1 }
 0x178   : > { %v726_v36 = vpop.f32.mrf.mxu0 }
 0x179   : > { %v3106_v62 = vpack.c.bf16 %v916_v20, %v912_v21  ;;  %1036 = vrot.lane.b32.xlu0 %v3100_v38, %s2673_s24  ;;  %2247 = vmatprep.mubr.msk.bf16.mxu0 %vm3814_vm0, %v3102_v5  ;;  %v3122_v46 = vpop.f32.mrf.mxu1 }
 0x17a   : > { %v728_v16 = vpop.f32.mrf.mxu0 }
 0x17b   : > { %v922_v31 = vadd.f32 %v921_v40, %v728_v16  ;;  %v955_v59 = vpop.f32.mrf.mxu1 }
 0x17c   : > { %v730_v42 = vpop.f32.mrf.mxu0 }
 0x17d   : > { %1034 = vrot.lane.b32.xlu0 %v3116_v26, %s2673_s24  ;;  %v959_v61 = vpop.f32.mrf.mxu1 }
 0x17e   : > { %v732_v52 = vpop.f32.mrf.mxu0 }
 0x17f   : > { %v926_v53 = vadd.f32 %v925_v48, %v732_v52  ;;  %v924_v48 = vadd.f32 %v3075_v44, %v730_v42  ;;  %v961_v10 = vpop.f32.mrf.mxu1 }
 0x180   : > { %v736_v55 = vpop.f32.mrf.mxu0 }
 0x181   : > { %v3126_v13 = vpack.c.bf16 %v926_v53, %v922_v31  ;;  %v3128_v47 = vadd.f32 %v929_v51, %v736_v55  ;;  %1032 = vrot.lane.b32.xlu0 %v3124_v50, %s2673_s24  ;;  %v920_v51 = vadd.f32 %v3073_v35, %v726_v36  ;;  %v963_v60 = vpop.f32.mrf.mxu1 }
 0x182   : > { %v738_v40 = vpop.f32.mrf.mxu0 }
 0x183   : > { %v932_v11 = vadd.f32 %v931_v0, %v738_v40  ;;  %v3144_v6 = vpack.c.bf16 %v924_v48, %v920_v51  ;;  %v965_v23 = vpop.f32.mrf.mxu1 }
 0x184   : > { %v3132_v41 = vpop.f32.mrf.mxu0 }
 0x185   : > { %1030 = vrot.lane.b32.xlu0 %v3047_v39, %s2673_s24  ;;  %v969_v20 = vpop.f32.mrf.mxu1 }
 0x186   : > { %v742_v2 = vpop.f32.mrf.mxu0 }
 0x187   : > { %v936_v58 = vadd.f32 %v935_v63, %v742_v2  ;;  %v971_v16 = vpop.f32.mrf.mxu1 }
 0x188   : > { %v3137_v7 = vpop.f32.mrf.mxu0 }
 0x189   : > { %v3140_v15 = vpack.c.bf16 %v936_v58, %v932_v11  ;;  %1028 = vrot.lane.b32.xlu0 %v3037_v25, %s2673_s24  ;;  %v973_v17 = vpop.f32.mrf.mxu1 }
 0x18a   : > { %v748_v0 = vpop.f32.mrf.mxu0 }
 0x18b   : > { %v942_v3 = vadd.f32 %v941_v12, %v748_v0  ;;  %v975_v55 = vpop.f32.mrf.mxu1 }
 0x18c   : > { %v750_v21 = vpop.f32.mrf.mxu0 }
 0x18d   : > { %1200 = vrot.lane.b32.xlu0 %v3144_v6, %s2673_s24  ;;  %v979_v2 = vpop.f32.mrf.mxu1 }
 0x18e   : > { %v752_v44 = vpop.f32.mrf.mxu0 }
 0x18f   : > { %v946_v63 = vadd.f32 %v945_v37, %v752_v44  ;;  %v981_v51 = vpop.f32.mrf.mxu1 }
 0x190   : > { %v756_v22 = vpop.f32.mrf.mxu0 }
 0x191   : > { %v3148_v56 = vpack.c.bf16 %v946_v63, %v942_v3  ;;  %v983_v63 = vpop.f32.mrf.mxu1 }
 0x192   : > { %v758_v35 = vpop.f32.mrf.mxu0 }
 0x193   : > { %v952_v27 = vadd.f32 %v951_v45, %v758_v35 }
 0x194   : > { %v760_v34 = vpop.f32.mrf.mxu0 }
 0x196   : > { %v762_v25 = vpop.f32.mrf.mxu0 }
 0x197   : > { %v956_v36 = vadd.f32 %v955_v59, %v762_v25 }
 0x198   : > { %v766_v32 = vpop.f32.mrf.mxu0 }
 0x199   : > { %v3150_v12 = vpack.c.bf16 %v956_v36, %v952_v27 }
 0x19a   : > { %v768_v57 = vpop.f32.mrf.mxu0 }
 0x19b   : > { %v962_v31 = vadd.f32 %v961_v10, %v768_v57 }
 0x19c   : > { %v770_v42 = vpop.f32.mrf.mxu0 }
 0x19e   : > { %v772_v52 = vpop.f32.mrf.mxu0 }
 0x19f   : > { %v966_v37 = vadd.f32 %v965_v23, %v772_v52  ;;  %v960_v52 = vadd.f32 %v959_v61, %v766_v32 }
 0x1a0   : > { %v776_v53 = vpop.f32.mrf.mxu0 }
 0x1a1   : > { %v3152_v40 = vpack.c.bf16 %v966_v37, %v962_v31  ;;  %v970_v57 = vadd.f32 %v969_v20, %v776_v53  ;;  %v954_v37 = vadd.f32 %v3122_v46, %v760_v34  ;;  %v944_v20 = vadd.f32 %v3096_v30, %v750_v21 }
 0x1a2   : > { %v778_v11 = vpop.f32.mrf.mxu0  ;;  %v934_v46 = vadd.f32 %v3079_v4, %v3132_v41 }
 0x1a3   : > { %v972_v45 = vadd.f32 %v971_v16, %v778_v11  ;;  %v964_v16 = vadd.f32 %v963_v60, %v770_v42  ;;  %v950_v11 = vadd.f32 %v3112_v24, %v756_v22  ;;  %v940_v60 = vadd.f32 %v3087_v19, %v3137_v7 }
 0x1a4   : > { %v780_v48 = vpop.f32.mrf.mxu0  ;;  %v3186_v24 = vpack.c.bf16 %v934_v46, %v3128_v47 }
 0x1a5   : > { %v974_v25 = vadd.f32 %v973_v17, %v780_v48  ;;  %v3173_v17 = vpack.c.bf16 %v954_v37, %v950_v11  ;;  %v3181_v61 = vpack.c.bf16 %v944_v20, %v940_v60 }
 0x1a6   : > { %v782_v58 = vpop.f32.mrf.mxu0 }
 0x1a7   : > { %v976_v59 = vadd.f32 %v975_v55, %v782_v58  ;;  %v3162_v31 = vpack.c.bf16 %v974_v25, %v970_v57  ;;  %v3167_v55 = vpack.c.bf16 %v964_v16, %v960_v52 }
 0x1a8   : > { %v786_v0 = vpop.f32.mrf.mxu0 }
 0x1a9   : > { %v3154_v3 = vpack.c.bf16 %v976_v59, %v972_v45  ;;  %v980_v23 = vadd.f32 %v979_v2, %v786_v0 }
 0x1aa   : > { %v788_v44 = vpop.f32.mrf.mxu0 }
 0x1ab   : > { %v3156_v10 = vadd.f32 %v981_v51, %v788_v44 }
 0x1ac   : > { %v790_v35 = vpop.f32.mrf.mxu0 }
 0x1ad   : > { %v984_v27 = vadd.f32 %v983_v63, %v790_v35 }
 0x1af   : > { %v3158_v36 = vpack.c.bf16 %v984_v27, %v980_v23 }
 0x1b1   : > { %1212 = vrot.lane.b32.xlu1 %v3158_v36, %s2673_s24 }
 0x1b5   : > { %1210 = vrot.lane.b32.xlu1 %v3162_v31, %s2673_s24 }
 0x1b9   : > { %1208 = vrot.lane.b32.xlu1 %v3167_v55, %s2673_s24 }
 0x1bd   : > { %1206 = vrot.lane.b32.xlu1 %v3173_v17, %s2673_s24 }
 0x1c1   : > { %1204 = vrot.lane.b32.xlu1 %v3181_v61, %s2673_s24 }
 0x1c5   : > { %1202 = vrot.lane.b32.xlu1 %v3186_v24, %s2673_s24 }
 0x1c9   : > { %1198 = vrot.lane.b32.xlu1 %v3102_v5, %s2673_s24 }
 0x1d3   : > { %v1039_v7 = vpop.permute.xlu1 %1038 }
 0x1d4   : > { %v1085_v47 = vsel %vm3814_vm0, %v1039_v7, 0 }
 0x1e3   : > { %v1043_v19 = vpop.permute.xlu0 %1042 }
 0x1e4   : > { %v1091_v30 = vsel %vm3814_vm0, %v1043_v19, 0  ;;  %2343 = vmatprep.subr.msk.bf16.mxu1 %vm3814_vm0, %v1043_v19 }
 0x1e5   : > { %2200 = vmatpush3.bf16.xpose.msra.mxu1 %v1091_v30 }
 0x1e7   : > { %v1041_v4 = vpop.permute.xlu0 %1040 }
 0x1e8   : > { %2344 = vmatprep.subr.msk.bf16.mxu1 %vm3814_vm0, %v1041_v4  ;;  %v1088_v41 = vsel %vm3814_vm0, %v1041_v4, 0 }
 0x1eb   : > { %v1037_v21 = vpop.permute.xlu0 %1036 }
 0x1ec   : > { %v1082_v5 = vsel %vm3814_vm0, %v1037_v21, 0 }
 0x1ed   : > { %2202 = vmatpush3.bf16.xpose.msra.mxu1 %v1088_v41 }
 0x1ee   : > { %2345 = vmatprep.subr.msk.bf16.mxu1 %vm3814_vm0, %v1039_v7 }
 0x1ef   : > { %v1035_v22 = vpop.permute.xlu0 %1034 }
 0x1f0   : > { %v1079_v34 = vsel %vm3814_vm0, %v1035_v22, 0 }
 0x1f3   : > { %v1033_v32 = vpop.permute.xlu0 %1032 }
 0x1f4   : > { %v1076_v42 = vsel %vm3814_vm0, %v1033_v32, 0 }
 0x1f5   : > { %2204 = vmatpush3.bf16.xpose.msra.mxu1 %v1085_v47 }
 0x1f6   : > { %2346 = vmatprep.subr.msk.bf16.mxu1 %vm3814_vm0, %v1037_v21 }
 0x1f7   : > { %v1031_v53 = vpop.permute.xlu0 %1030 }
 0x1f8   : > { %v1073_v45 = vsel %vm3814_vm0, %v1031_v53, 0 }
 0x1fb   : > { %v1029_v2 = vpop.permute.xlu0 %1028 }
 0x1fc   : > { %v1070_v48 = vsel %vm3814_vm0, %v1029_v2, 0 }
 0x1fd   : > { %2206 = vmatpush3.bf16.xpose.msra.mxu1 %v1082_v5 }
 0x1fe   : > { %2347 = vmatprep.subr.msk.bf16.mxu1 %vm3814_vm0, %v1035_v22 }
 0x205   : > { %2208 = vmatpush3.bf16.xpose.msra.mxu1 %v1079_v34 }
 0x206   : > { %2348 = vmatprep.subr.msk.bf16.mxu1 %vm3814_vm0, %v1033_v32 }
 0x20d   : > { %2210 = vmatpush3.bf16.xpose.msra.mxu1 %v1076_v42 }
 0x20e   : > { %2349 = vmatprep.subr.msk.bf16.mxu1 %vm3814_vm0, %v1031_v53 }
 0x215   : > { %2212 = vmatpush3.bf16.xpose.msra.mxu1 %v1073_v45 }
 0x216   : > { %2350 = vmatprep.subr.msk.bf16.mxu1 %vm3814_vm0, %v1029_v2 }
 0x21d   : > { %2214 = vmatpush3.bf16.xpose.msra.mxu1 %v1070_v48 }
 0x21e   : > { %2263 = vmatprep.subr.bf16.mxu1 %v3083_v18 }
 0x223   : > { %v1213_v58 = vpop.permute.xlu1 %1212 }
 0x224   : > { %v1260_v59 = vsel %vm3814_vm0, %v1213_v58, 0  ;;  %2216 = vmatmul.mubr.msk.bf16.vlgmr.msra.gmra.mxu1 %vm3814_vm0, %v3047_v39  ;;  %2351 = vmatprep.subr.msk.bf16.mxu0 %vm3814_vm0, %v1213_v58 }
 0x225   : > { %2219 = vmatprep.mubr.msk.bf16.mxu1 %vm3814_vm0, %v3124_v50  ;;  %2232 = vmatpush3.bf16.xpose.msra.mxu0 %v1260_v59 }
 0x226   : > { %2264 = vmatpush3.bf16.msra.mxu1 %v3083_v18 }
 0x227   : > { %2265 = vmatprep.subr.bf16.mxu1 %v3077_v49  ;;  %v1211_v51 = vpop.permute.xlu1 %1210 }
 0x228   : > { %2352 = vmatprep.subr.msk.bf16.mxu0 %vm3814_vm0, %v1211_v51  ;;  %v1257_v0 = vsel %vm3814_vm0, %v1211_v51, 0 }
 0x22a   : > { %2266 = vmatpush3.bf16.msra.mxu1 %v3077_v49 }
 0x22b   : > { %2267 = vmatprep.subr.bf16.mxu1 %v3069_v33  ;;  %v1209_v39 = vpop.permute.xlu1 %1208 }
 0x22c   : > { %2220 = vmatmul.mubr.msk.bf16.gmra.mxu1 %vm3814_vm0, %v3116_v26  ;;  %v1254_v49 = vsel %vm3814_vm0, %v1209_v39, 0 }
 0x22d   : > { %2223 = vmatprep.mubr.msk.bf16.mxu1 %vm3814_vm0, %v3100_v38  ;;  %2234 = vmatpush3.bf16.xpose.msra.mxu0 %v1257_v0 }
 0x22e   : > { %2268 = vmatpush3.bf16.msra.mxu1 %v3069_v33  ;;  %2353 = vmatprep.subr.msk.bf16.mxu0 %vm3814_vm0, %v1209_v39  ;;  %v792_v33 = vpop.f32.mrf.mxu0 }
 0x22f   : > { %2269 = vmatprep.subr.bf16.mxu1 %v3065_v14  ;;  %v1207_v18 = vpop.permute.xlu1 %1206 }
 0x230   : > { %v1251_v38 = vsel %vm3814_vm0, %v1207_v18, 0 }
 0x232   : > { %2270 = vmatpush3.bf16.msra.mxu1 %v3065_v14  ;;  %v985_v14 = vpop.f32.mrf.mxu1 }
 0x233   : > { %2271 = vmatprep.subr.bf16.mxu1 %v3063_v1 }
 0x234   : > { %2224 = vmatmul.mubr.msk.bf16.gmra.mxu1 %vm3814_vm0, %v3067_v28  ;;  %v986_v28 = vadd.f32 %v985_v14, %v792_v33 }
 0x235   : > { %2227 = vmatprep.mubr.msk.bf16.mxu1 %vm3814_vm0, %v3090_v8  ;;  %2236 = vmatpush3.bf16.xpose.msra.mxu0 %v1254_v49  ;;  %v1205_v8 = vpop.permute.xlu1 %1204 }
 0x236   : > { %2272 = vmatpush3.bf16.msra.mxu1 %v3063_v1  ;;  %2354 = vmatprep.subr.msk.bf16.mxu0 %vm3814_vm0, %v1207_v18  ;;  %v3247_v1 = vpack.c.bf16 %v986_v28, %v3156_v10 }
 0x237   : > { %2273 = vmatprep.subr.bf16.mxu1 %v3057_v54 }
 0x239   : > { %v1203_v26 = vpop.permute.xlu1 %1202 }
 0x23a   : > { %2274 = vmatpush3.bf16.msra.mxu1 %v3057_v54  ;;  %v1248_v54 = vsel %vm3814_vm0, %v1205_v8, 0 }
 0x23b   : > { %2275 = vmatprep.subr.bf16.mxu1 %v3051_v43 }
 0x23c   : > { %2228 = vmatmul.mubr.msk.bf16.gmra.mxu1 %vm3814_vm0, %v3081_v9  ;;  %v1245_v9 = vsel %vm3814_vm0, %v1203_v26, 0 }
 0x23d   : > { %2238 = vmatpush3.bf16.xpose.msra.mxu0 %v1251_v38  ;;  %v1199_v44 = vpop.permute.xlu1 %1198 }
 0x23e   : > { %2276 = vmatpush3.bf16.msra.mxu1 %v3051_v43  ;;  %2355 = vmatprep.subr.msk.bf16.mxu0 %vm3814_vm0, %v1205_v8  ;;  %v1201_v43 = vpop.permute.xlu0 %1200 }
 0x23f   : > { %2277 = vmatprep.subr.bf16.mxu1 %v3039_v29  ;;  %v1242_v50 = vsel %vm3814_vm0, %v1201_v43, 0 }
 0x242   : > { %2278 = vmatpush3.bf16.msra.mxu1 %v3039_v29  ;;  %v1239_v29 = vsel %vm3814_vm0, %v1199_v44, 0 }
 0x243   : > { %2327 = vmatprep.subr.bf16.mxu1 %v3247_v1 }
 0x245   : > { %2240 = vmatpush3.bf16.xpose.msra.mxu0 %v1248_v54 }
 0x246   : > { %2356 = vmatprep.subr.msk.bf16.mxu0 %vm3814_vm0, %v1203_v26 }
 0x24d   : > { %2242 = vmatpush3.bf16.xpose.msra.mxu0 %v1245_v9 }
 0x24e   : > { %2357 = vmatprep.subr.msk.bf16.mxu0 %vm3814_vm0, %v1201_v43 }
 0x255   : > { %2244 = vmatpush3.bf16.xpose.msra.mxu0 %v1242_v50 }
 0x256   : > { %2358 = vmatprep.subr.msk.bf16.mxu0 %vm3814_vm0, %v1199_v44 }
 0x25d   : > { %2246 = vmatpush3.bf16.xpose.msra.mxu0 %v1239_v29 }
 0x25e   : > { %2295 = vmatprep.subr.bf16.mxu0 %v3247_v1 }
 0x264   : > { %2248 = vmatmul.mubr.msk.bf16.vlgmr.msra.gmra.mxu0 %vm3814_vm0, %v3144_v6  ;;  %v1359_v6 = vlaneseq }
 0x265   : > { %2251 = vmatprep.mubr.msk.bf16.mxu0 %vm3814_vm0, %v3186_v24  ;;  %2296 = vmatpush3.bf16.msra.mxu0 %v3247_v1 }
 0x266   : > { %2297 = vmatprep.subr.bf16.mxu0 %v3154_v3  ;;  %v3288_v10 = vshrl.u32 %v1359_v6, 7  ;;  %v3293_v35 = vand.u32 127, %v1359_v6 }
 0x268   : > { %v3291_v63 = vadd.s32 16, %v3288_v10  ;;  %v3298_v27 = vadd.s32 8, %v3288_v10  ;;  %vm1378_vm2 = vcmp.le.s32.totalorder %v3293_v35, %v3288_v10  ;;  %v3309_v57 = vadd.s32 24, %v3288_v10 }
 0x269   : > { %2298 = vmatpush3.bf16.msra.mxu0 %v3154_v3  ;;  %v3358_v30 = vadd.s32 80, %v3288_v10  ;;  %v3369_v7 = vadd.s32 88, %v3288_v10  ;;  %v3380_v5 = vadd.s32 64, %v3288_v10  ;;  %v3391_v32 = vadd.s32 72, %v3288_v10 }
 0x26a   : > { %2299 = vmatprep.subr.bf16.mxu0 %v3152_v40  ;;  %vm1380_vm1 = vcmp.le.s32.totalorder %v3293_v35, %v3291_v63  ;;  %vm1379_vm3 = vcmp.le.s32.totalorder %v3293_v35, %v3298_v27  ;;  %vm1381_vm4 = vcmp.le.s32.totalorder %v3293_v35, %v3309_v57  ;;  %v3402_v45 = vadd.s32 112, %v3288_v10 }
 0x26b   : > { %vm1388_vm9 = vcmp.le.s32.totalorder %v3293_v35, %v3358_v30  ;;  %vm1389_vm10 = vcmp.le.s32.totalorder %v3293_v35, %v3369_v7  ;;  %vm1386_vm11 = vcmp.le.s32.totalorder %v3293_v35, %v3380_v5  ;;  %vm1387_vm12 = vcmp.le.s32.totalorder %v3293_v35, %v3391_v32 }
 0x26c   : > { %2252 = vmatmul.mubr.msk.bf16.gmra.mxu0 %vm3814_vm0, %v3181_v61  ;;  %v3347_v61 = vadd.s32 40, %v3288_v10  ;;  %v3413_v58 = vadd.s32 120, %v3288_v10  ;;  %vm1392_vm13 = vcmp.le.s32.totalorder %v3293_v35, %v3402_v45  ;;  %v1372_v0 = vadd.s32 96, %v3288_v10 }
 0x26d   : > { %2255 = vmatprep.mubr.msk.bf16.mxu0 %vm3814_vm0, %v3173_v17  ;;  %2300 = vmatpush3.bf16.msra.mxu0 %v3152_v40  ;;  %v3336_v17 = vadd.s32 32, %v3288_v10  ;;  %v1373_v18 = vadd.s32 104, %v3288_v10 }
 0x26e   : > { %2301 = vmatprep.subr.bf16.mxu0 %v3150_v12  ;;  %vm1383_vm8 = vcmp.le.s32.totalorder %v3293_v35, %v3347_v61  ;;  %vm1393_vm14 = vcmp.le.s32.totalorder %v3293_v35, %v3413_v58  ;;  %vm1390_vm15 = vcmp.le.s32.totalorder %v3293_v35, %v1372_v0 }
 0x26f   : > { %vm1382_vm7 = vcmp.le.s32.totalorder %v3293_v35, %v3336_v17 }
 0x271   : > { %2302 = vmatpush3.bf16.msra.mxu0 %v3150_v12 }
 0x272   : > { %2303 = vmatprep.subr.bf16.mxu0 %v3148_v56 }
 0x274   : > { %2256 = vmatmul.mubr.msk.bf16.gmra.mxu0 %vm3814_vm0, %v3167_v55  ;;  %v3325_v55 = vadd.s32 56, %v3288_v10 }
 0x275   : > { %2259 = vmatprep.mubr.msk.bf16.mxu0 %vm3814_vm0, %v3162_v31  ;;  %2304 = vmatpush3.bf16.msra.mxu0 %v3148_v56  ;;  %v3314_v31 = vadd.s32 48, %v3288_v10 }
 0x276   : > { %2305 = vmatprep.subr.bf16.mxu0 %v3140_v15  ;;  %vm1385_vm6 = vcmp.le.s32.totalorder %v3293_v35, %v3325_v55 }
 0x277   : > { %vm1384_vm5 = vcmp.le.s32.totalorder %v3293_v35, %v3314_v31 }
 0x279   : > { %2306 = vmatpush3.bf16.msra.mxu0 %v3140_v15 }
 0x27a   : > { %2307 = vmatprep.subr.bf16.mxu0 %v3126_v13 }
 0x27c   : > { %2260 = vmatmul.mubr.msk.bf16.gmra.mxu0 %vm3814_vm0, %v3158_v36  ;;  %vm1391_vm0 = vcmp.le.s32.totalorder %v3293_v35, %v1373_v18 }
 0x27d   : > { %2308 = vmatpush3.bf16.msra.mxu0 %v3126_v13 }
 0x27e   : > { %2309 = vmatprep.subr.bf16.mxu0 %v3106_v62 }
 0x281   : > { %2310 = vmatpush3.bf16.msra.mxu0 %v3106_v62 }
 0x2e4   : > { %v2217_v23 = vpop.f32.mrf.mxu1 }
 0x2e5   : > { %v3303_v25 = vsel %vm1380_vm1, %v2217_v23, -inf }
 0x2e6   : > { %v1127_v36 = vpop.f32.mrf.mxu1  ;;  %1462 = vmax.xlane.f32.xlu0 %v3303_v25 }
 0x2e7   : > { %v3319_v52 = vsel %vm1378_vm2, %v1127_v36, -inf }
 0x2e8   : > { %v2218_v16 = vpop.f32.mrf.mxu1 }
 0x2e9   : > { %v3341_v60 = vsel %vm1381_vm4, %v2218_v16, -inf }
 0x2ea   : > { %v1130_v37 = vpop.f32.mrf.mxu1  ;;  %1458 = vmax.xlane.f32.xlu0 %v3319_v52 }
 0x2eb   : > { %v3330_v11 = vsel %vm1379_vm3, %v1130_v37, -inf }
 0x2ec   : > { %v2221_v20 = vpop.f32.mrf.mxu1  ;;  %1460 = vmax.xlane.f32.xlu1 %v3330_v11 }
 0x2ed   : > { %v3352_v24 = vsel %vm1384_vm5, %v2221_v20, -inf }
 0x2ee   : > { %v1143_v46 = vpop.f32.mrf.mxu1  ;;  %1464 = vmax.xlane.f32.xlu0 %v3341_v60 }
 0x2ef   : > { %v3374_v47 = vsel %vm1382_vm7, %v1143_v46, -inf }
 0x2f0   : > { %v2222_v19 = vpop.f32.mrf.mxu1  ;;  %1470 = vmax.xlane.f32.xlu1 %v3352_v24 }
 0x2f1   : > { %v3363_v4 = vsel %vm1385_vm6, %v2222_v19, -inf }
 0x2f2   : > { %v1146_v41 = vpop.f32.mrf.mxu1  ;;  %1472 = vmax.xlane.f32.xlu0 %v3363_v4 }
 0x2f3   : > { %v3385_v22 = vsel %vm1383_vm8, %v1146_v41, -inf }
 0x2f4   : > { %v2225_v21 = vpop.f32.mrf.mxu1  ;;  %1466 = vmax.xlane.f32.xlu1 %v3374_v47 }
 0x2f5   : > { %v3396_v42 = vsel %vm1388_vm9, %v2225_v21, -inf }
 0x2f6   : > { %v1159_v34 = vpop.f32.mrf.mxu1  ;;  %1468 = vmax.xlane.f32.xlu0 %v3385_v22 }
 0x2f7   : > { %v3418_v59 = vsel %vm1386_vm11, %v1159_v34, -inf }
 0x2f8   : > { %v2226_v53 = vpop.f32.mrf.mxu1  ;;  %1478 = vmax.xlane.f32.xlu1 %v3396_v42 }
 0x2f9   : > { %v3407_v2 = vsel %vm1389_vm10, %v2226_v53, -inf }
 0x2fa   : > { %v1162_v48 = vpop.f32.mrf.mxu1  ;;  %1480 = vmax.xlane.f32.xlu0 %v3407_v2 }
 0x2fb   : > { %v3427_v39 = vsel %vm1387_vm12, %v1162_v48, -inf }
 0x2fc   : > { %v2229_v51 = vpop.f32.mrf.mxu1  ;;  %1474 = vmax.xlane.f32.xlu1 %v3418_v59 }
 0x2fd   : > { %v3436_v33 = vsel %vm1392_vm13, %v2229_v51, -inf }
 0x2fe   : > { %v1175_v49 = vpop.f32.mrf.mxu1  ;;  %1476 = vmax.xlane.f32.xlu0 %v3427_v39 }
 0x2ff   : > { %v3449_v8 = vsel %vm1390_vm15, %v1175_v49, -inf }
 0x300   : > { %v2230_v14 = vpop.f32.mrf.mxu1  ;;  %1486 = vmax.xlane.f32.xlu1 %v3436_v33 }
 0x301   : > { %v3443_v38 = vsel %vm1393_vm14, %v2230_v14, -inf }
 0x302   : > { %v1178_v28 = vpop.f32.mrf.mxu1  ;;  %1488 = vmax.xlane.f32.xlu0 %v3443_v38 }
 0x303   : > { %v3454_v54 = vsel %vm1391_vm0, %v1178_v28, -inf }
 0x304   : > { %1482 = vmax.xlane.f32.xlu1 %v3449_v8 }
 0x306   : > { %1484 = vmax.xlane.f32.xlu0 %v3454_v54 }
 0x324   : > { %v2249_v26 = vpop.f32.mrf.mxu0 }
 0x325   : > { %v3460_v9 = vsel %vm1380_vm1, %v2249_v26, -inf }
 0x326   : > { %1494 = vmax.xlane.f32.xlu1 %v3460_v9  ;;  %v1296_v43 = vpop.f32.mrf.mxu0 }
 0x327   : > { %v3466_v44 = vsel %vm1378_vm2, %v1296_v43, -inf }
 0x328   : > { %v2250_v50 = vpop.f32.mrf.mxu0 }
 0x329   : > { %v3471_v29 = vsel %vm1381_vm4, %v2250_v50, -inf }
 0x32a   : > { %1490 = vmax.xlane.f32.xlu1 %v3466_v44  ;;  %1496 = vmax.xlane.f32.xlu0 %v3471_v29  ;;  %v1299_v6 = vpop.f32.mrf.mxu0 }
 0x32b   : > { %v3478_v23 = vsel %vm1379_vm3, %v1299_v6, -inf }
 0x32c   : > { %v2253_v63 = vpop.f32.mrf.mxu0 }
 0x32d   : > { %v3514_v21 = vsel %vm1384_vm5, %v2253_v63, -inf }
 0x32e   : > { %1492 = vmax.xlane.f32.xlu0 %v3478_v23  ;;  %v1312_v10 = vpop.f32.mrf.mxu0 }
 0x32f   : > { %v3484_v36 = vsel %vm1382_vm7, %v1312_v10, -inf }
 0x330   : > { %1498 = vmax.xlane.f32.xlu1 %v3484_v36  ;;  %v2254_v57 = vpop.f32.mrf.mxu0 }
 0x331   : > { %v3526_v53 = vsel %vm1385_vm6, %v2254_v57, -inf }
 0x332   : > { %v1315_v16 = vpop.f32.mrf.mxu0 }
 0x333   : > { %v3490_v37 = vsel %vm1383_vm8, %v1315_v16, -inf }
 0x334   : > { %1500 = vmax.xlane.f32.xlu0 %v3490_v37  ;;  %v2257_v27 = vpop.f32.mrf.mxu0 }
 0x335   : > { %v3496_v20 = vsel %vm1388_vm9, %v2257_v27, -inf }
 0x336   : > { %1510 = vmax.xlane.f32.xlu1 %v3496_v20  ;;  %v1328_v17 = vpop.f32.mrf.mxu0 }
 0x337   : > { %v3502_v19 = vsel %vm1386_vm11, %v1328_v17, -inf }
 0x338   : > { %v2258_v46 = vpop.f32.mrf.mxu0 }
 0x339   : > { %v3507_v61 = vsel %vm1389_vm10, %v2258_v46, -inf }
 0x33a   : > { %1506 = vmax.xlane.f32.xlu1 %v3502_v19  ;;  %1512 = vmax.xlane.f32.xlu0 %v3507_v61  ;;  %v1331_v30 = vpop.f32.mrf.mxu0 }
 0x33b   : > { %v3519_v5 = vsel %vm1387_vm12, %v1331_v30, -inf }
 0x33c   : > { %v2261_v41 = vpop.f32.mrf.mxu0 }
 0x33d   : > { %v3537_v48 = vsel %vm1392_vm13, %v2261_v41, -inf }
 0x33e   : > { %1502 = vmax.xlane.f32.xlu1 %v3514_v21  ;;  %1508 = vmax.xlane.f32.xlu0 %v3519_v5  ;;  %v1344_v7 = vpop.f32.mrf.mxu0 }
 0x33f   : > { %v3530_v31 = vsel %vm1390_vm15, %v1344_v7, -inf }
 0x340   : > { %v2262_v34 = vpop.f32.mrf.mxu0 }
 0x341   : > { %v3548_v55 = vsel %vm1393_vm14, %v2262_v34, -inf }
 0x342   : > { %1504 = vmax.xlane.f32.xlu0 %v3526_v53  ;;  %1514 = vmax.xlane.f32.xlu1 %v3530_v31  ;;  %v1347_v32 = vpop.f32.mrf.mxu0 }
 0x343   : > { %v3541_v51 = vsel %vm1391_vm0, %v1347_v32, -inf  ;;  %vm3819_vm0 = vcmask 523264  }
 0x344   : > { %vm3820_vm1 = vmmov %vm3819_vm0 }
 0x345   : > { %vm3821_vm2 = vmmov %vm3819_vm0 }
 0x346   : > { %1518 = vmax.xlane.f32.xlu1 %v3537_v48  ;;  %1516 = vmax.xlane.f32.xlu0 %v3541_v51  ;;  %vm3822_vm3 = vmmov %vm3819_vm0 }
 0x347   : > { %vm3823_vm4 = vmmov %vm3819_vm0 }
 0x348   : > { %vm3824_vm5 = vmmov %vm3819_vm0 }
 0x349   : > { %vm3825_vm6 = vmmov %vm3819_vm0 }
 0x34a   : > { %1520 = vmax.xlane.f32.xlu0 %v3548_v55  ;;  %vm3826_vm7 = vmmov %vm3819_vm0 }
 0x34b   : > { %vm3827_vm8 = vmmov %vm3819_vm0 }
 0x34c   : > { %vm3828_vm9 = vmmov %vm3819_vm0 }
 0x34d   : > { %vm3829_vm10 = vmmov %vm3819_vm0 }
 0x34e   : > { %vm3830_vm11 = vmmov %vm3819_vm0 }
 0x34f   : > { %vm3831_vm12 = vmmov %vm3819_vm0 }
 0x350   : > { %vm3832_vm13 = vmmov %vm3819_vm0 }
 0x351   : > { %vm3833_vm14 = vmmov %vm3819_vm0 }
 0x352   : > { %vm3834_vm15 = vmmov %vm3819_vm0 }
 0x36f   : > { %v1463_v0 = vpop.xlane.xlu0 %1462 }
 0x370   : > { %v1524_v45 = vsub.f32 %v3303_v25, %v1463_v0 }
 0x372   : > { %v1558_v49 = vmul.f32 1.442695, %v1524_v45 }
 0x373   : > { %v1459_v14 = vpop.xlane.xlu0 %1458 }
 0x374   : > { %2477 = vpow2.f32 %v1558_v49  ;;  %v1522_v18 = vsub.f32 %v3319_v52, %v1459_v14 }
 0x375   : > { %v1461_v28 = vpop.xlane.xlu1 %1460 }
 0x376   : > { %v1554_v26 = vmul.f32 1.442695, %v1522_v18  ;;  %v1523_v50 = vsub.f32 %v3330_v11, %v1461_v28 }
 0x377   : > { %v1465_v43 = vpop.xlane.xlu0 %1464 }
 0x378   : > { %2479 = vpow2.f32 %v1554_v26  ;;  %v1525_v35 = vsub.f32 %v3341_v60, %v1465_v43  ;;  %v1556_v57 = vmul.f32 1.442695, %v1523_v50 }
 0x379   : > { %v1471_v58 = vpop.xlane.xlu1 %1470 }
 0x37a   : > { %v1560_v6 = vmul.f32 1.442695, %v1525_v35  ;;  %v1528_v63 = vsub.f32 %v3352_v24, %v1471_v58 }
 0x37b   : > { %v1473_v10 = vpop.xlane.xlu0 %1472 }
 0x37c   : > { %2481 = vpow2.f32 %v1560_v6  ;;  %v1566_v25 = vmul.f32 1.442695, %v1528_v63  ;;  %v1529_v16 = vsub.f32 %v3363_v4, %v1473_v10 }
 0x37d   : > { %v1467_v27 = vpop.xlane.xlu1 %1466 }
 0x37e   : > { %2483 = vpow2.f32 %v1566_v25  ;;  %v1526_v52 = vsub.f32 %v3374_v47, %v1467_v27  ;;  %v1568_v46 = vmul.f32 1.442695, %v1529_v16 }
 0x37f   : > { %v1469_v17 = vpop.xlane.xlu0 %1468  ;;  %2485 = vpow2.f32 %v1556_v57 }
 0x380   : > { %v1562_v11 = vmul.f32 1.442695, %v1526_v52  ;;  %v1527_v60 = vsub.f32 %v3385_v22, %v1469_v17 }
 0x381   : > { %v3559_v30 = vpop.eup %2477  ;;  %v1479_v41 = vpop.xlane.xlu1 %1478 }
 0x382   : > { %2487 = vpow2.f32 %v1562_v11  ;;  %v1532_v24 = vsub.f32 %v3396_v42, %v1479_v41  ;;  %1622 = vadd.xlane.f32.xlu1 %v3559_v30  ;;  %v1564_v4 = vmul.f32 1.442695, %v1527_v60 }
 0x383   : > { %v1481_v7 = vpop.xlane.xlu0 %1480  ;;  %2489 = vpow2.f32 %v1568_v46 }
 0x384   : > { %v1574_v34 = vmul.f32 1.442695, %v1532_v24  ;;  %v1533_v47 = vsub.f32 %v3407_v2, %v1481_v7 }
 0x385   : > { %v3564_v32 = vpop.eup %2479  ;;  %v1475_v0 = vpop.xlane.xlu1 %1474 }
 0x386   : > { %2491 = vpow2.f32 %v1574_v34  ;;  %v1530_v22 = vsub.f32 %v3418_v59, %v1475_v0  ;;  %1618 = vadd.xlane.f32.xlu1 %v3564_v32  ;;  %v1576_v49 = vmul.f32 1.442695, %v1533_v47 }
 0x387   : > { %v1477_v45 = vpop.xlane.xlu0 %1476  ;;  %2493 = vpow2.f32 %v1564_v4 }
 0x388   : > { %v1570_v42 = vmul.f32 1.442695, %v1530_v22  ;;  %v1531_v14 = vsub.f32 %v3427_v39, %v1477_v45 }
 0x389   : > { %v3569_v18 = vpop.eup %2481  ;;  %v1487_v28 = vpop.xlane.xlu1 %1486 }
 0x38a   : > { %2495 = vpow2.f32 %v1570_v42  ;;  %v1536_v2 = vsub.f32 %v3436_v33, %v1487_v28  ;;  %1624 = vadd.xlane.f32.xlu0 %v3569_v18  ;;  %v1572_v59 = vmul.f32 1.442695, %v1531_v14 }
 0x38b   : > { %v3573_v26 = vpop.eup %2483  ;;  %v1489_v43 = vpop.xlane.xlu0 %1488  ;;  %2497 = vpow2.f32 %v1576_v49 }
 0x38c   : > { %v1582_v50 = vmul.f32 1.442695, %v1536_v2  ;;  %v1537_v35 = vsub.f32 %v3443_v38, %v1489_v43  ;;  %1630 = vadd.xlane.f32.xlu1 %v3573_v26  ;;  %v3577_v58 = vpop.eup %2485 }
 0x38d   : > { %v1483_v39 = vpop.xlane.xlu1 %1482 }
 0x38e   : > { %2499 = vpow2.f32 %v1582_v50  ;;  %v1534_v6 = vsub.f32 %v3449_v8, %v1483_v39  ;;  %1620 = vadd.xlane.f32.xlu0 %v3577_v58  ;;  %v1584_v10 = vmul.f32 1.442695, %v1537_v35 }
 0x38f   : > { %v3581_v33 = vpop.eup %2487  ;;  %v1485_v63 = vpop.xlane.xlu0 %1484  ;;  %2501 = vpow2.f32 %v1572_v59 }
 0x390   : > { %v1578_v57 = vmul.f32 1.442695, %v1534_v6  ;;  %v1535_v25 = vsub.f32 %v3454_v54, %v1485_v63  ;;  %1626 = vadd.xlane.f32.xlu1 %v3581_v33  ;;  %v3585_v38 = vpop.eup %2489 }
 0x392   : > { %2503 = vpow2.f32 %v1578_v57  ;;  %1632 = vadd.xlane.f32.xlu0 %v3585_v38  ;;  %v1580_v8 = vmul.f32 1.442695, %v1535_v25 }
 0x393   : > { %v3588_v16 = vpop.eup %2491  ;;  %2505 = vpow2.f32 %v1584_v10 }
 0x394   : > { %1638 = vadd.xlane.f32.xlu1 %v3588_v16  ;;  %v3591_v27 = vpop.eup %2493  ;;  %2507 = vpow2.f32 %v1580_v8 }
 0x396   : > { %1628 = vadd.xlane.f32.xlu0 %v3591_v27 }
 0x397   : > { %v3594_v52 = vpop.eup %2495 }
 0x398   : > { %1634 = vadd.xlane.f32.xlu1 %v3594_v52  ;;  %v3597_v54 = vpop.eup %2497 }
 0x39a   : > { %1640 = vadd.xlane.f32.xlu0 %v3597_v54 }
 0x39b   : > { %v3600_v17 = vpop.eup %2499 }
 0x39c   : > { %1646 = vadd.xlane.f32.xlu1 %v3600_v17  ;;  %v3603_v46 = vpop.eup %2501 }
 0x39e   : > { %1636 = vadd.xlane.f32.xlu0 %v3603_v46 }
 0x39f   : > { %v3606_v11 = vpop.eup %2503 }
 0x3a0   : > { %1642 = vadd.xlane.f32.xlu1 %v3606_v11  ;;  %v3609_v60 = vpop.eup %2505 }
 0x3a1   : > { %v3612_v41 = vpop.eup %2507 }
 0x3a2   : > { %1648 = vadd.xlane.f32.xlu0 %v3609_v60 }
 0x3a6   : > { %1644 = vadd.xlane.f32.xlu0 %v3612_v41 }
 0x3af   : > { %v1495_v24 = vpop.xlane.xlu1 %1494 }
 0x3b0   : > { %v1540_v7 = vsub.f32 %v3460_v9, %v1495_v24 }
 0x3b2   : > { %v1590_v4 = vmul.f32 1.442695, %v1540_v7 }
 0x3b3   : > { %v1491_v34 = vpop.xlane.xlu1 %1490  ;;  %v1497_v47 = vpop.xlane.xlu0 %1496 }
 0x3b4   : > { %2509 = vpow2.f32 %v1590_v4  ;;  %v1538_v0 = vsub.f32 %v3466_v44, %v1491_v34  ;;  %v1541_v22 = vsub.f32 %v3471_v29, %v1497_v47 }
 0x3b6   : > { %v1586_v45 = vmul.f32 1.442695, %v1538_v0  ;;  %v1592_v49 = vmul.f32 1.442695, %v1541_v22 }
 0x3b7   : > { %v1493_v42 = vpop.xlane.xlu0 %1492 }
 0x3b8   : > { %2511 = vpow2.f32 %v1586_v45  ;;  %v1539_v14 = vsub.f32 %v3478_v23, %v1493_v42 }
 0x3b9   : > { %2513 = vpow2.f32 %v1592_v49  ;;  %v1499_v28 = vpop.xlane.xlu1 %1498 }
 0x3ba   : > { %v1588_v2 = vmul.f32 1.442695, %v1539_v14  ;;  %v1542_v43 = vsub.f32 %v3484_v36, %v1499_v28 }
 0x3bc   : > { %2515 = vpow2.f32 %v1588_v2  ;;  %v1594_v9 = vmul.f32 1.442695, %v1542_v43 }
 0x3bd   : > { %v1501_v59 = vpop.xlane.xlu0 %1500 }
 0x3be   : > { %2517 = vpow2.f32 %v1594_v9  ;;  %v1543_v50 = vsub.f32 %v3490_v37, %v1501_v59 }
 0x3bf   : > { %v1511_v44 = vpop.xlane.xlu1 %1510 }
 0x3c0   : > { %v1596_v35 = vmul.f32 1.442695, %v1543_v50  ;;  %v1548_v29 = vsub.f32 %v3496_v20, %v1511_v44 }
 0x3c1   : > { %v3622_v39 = vpop.eup %2509 }
 0x3c2   : > { %2519 = vpow2.f32 %v1596_v35  ;;  %v1606_v6 = vmul.f32 1.442695, %v1548_v29  ;;  %1654 = vadd.xlane.f32.xlu1 %v3622_v39 }
 0x3c3   : > { %v1507_v23 = vpop.xlane.xlu1 %1506  ;;  %v1513_v63 = vpop.xlane.xlu0 %1512 }
 0x3c4   : > { %2521 = vpow2.f32 %v1606_v6  ;;  %v1546_v36 = vsub.f32 %v3502_v19, %v1507_v23  ;;  %v1549_v10 = vsub.f32 %v3507_v61, %v1513_v63 }
 0x3c5   : > { %v3627_v57 = vpop.eup %2511 }
 0x3c6   : > { %v3629_v37 = vpop.eup %2513  ;;  %v1602_v25 = vmul.f32 1.442695, %v1546_v36  ;;  %v1608_v8 = vmul.f32 1.442695, %v1549_v10  ;;  %1650 = vadd.xlane.f32.xlu1 %v3627_v57 }
 0x3c7   : > { %1656 = vadd.xlane.f32.xlu0 %v3629_v37  ;;  %v1503_v20 = vpop.xlane.xlu1 %1502  ;;  %v1509_v24 = vpop.xlane.xlu0 %1508 }
 0x3c8   : > { %2523 = vpow2.f32 %v1602_v25  ;;  %v1544_v7 = vsub.f32 %v3514_v21, %v1503_v20  ;;  %v1547_v4 = vsub.f32 %v3519_v5, %v1509_v24 }
 0x3c9   : > { %v3635_v19 = vpop.eup %2515  ;;  %2525 = vpow2.f32 %v1608_v8 }
 0x3ca   : > { %v1598_v61 = vmul.f32 1.442695, %v1544_v7  ;;  %v1604_v34 = vmul.f32 1.442695, %v1547_v4 }
 0x3cb   : > { %v3637_v47 = vpop.eup %2517  ;;  %1652 = vadd.xlane.f32.xlu0 %v3635_v19  ;;  %v1505_v0 = vpop.xlane.xlu0 %1504 }
 0x3cc   : > { %v1515_v22 = vpop.xlane.xlu1 %1514  ;;  %2527 = vpow2.f32 %v1598_v61  ;;  %v1545_v45 = vsub.f32 %v3526_v53, %v1505_v0  ;;  %1658 = vadd.xlane.f32.xlu1 %v3637_v47 }
 0x3cd   : > { %v1550_v49 = vsub.f32 %v3530_v31, %v1515_v22  ;;  %2529 = vpow2.f32 %v1604_v34 }
 0x3ce   : > { %v1600_v21 = vmul.f32 1.442695, %v1545_v45 }
 0x3cf   : > { %v1610_v5 = vmul.f32 1.442695, %v1550_v49  ;;  %v3643_v42 = vpop.eup %2519  ;;  %v1517_v28 = vpop.xlane.xlu0 %1516 }
 0x3d0   : > { %v1519_v14 = vpop.xlane.xlu1 %1518  ;;  %2531 = vpow2.f32 %v1600_v21  ;;  %v1551_v43 = vsub.f32 %v3541_v51, %v1517_v28  ;;  %1660 = vadd.xlane.f32.xlu0 %v3643_v42 }
 0x3d1   : > { %v1552_v2 = vsub.f32 %v3537_v48, %v1519_v14  ;;  %v3648_v9 = vpop.eup %2521  ;;  %2533 = vpow2.f32 %v1610_v5 }
 0x3d2   : > { %v1612_v31 = vmul.f32 1.442695, %v1551_v43  ;;  %1670 = vadd.xlane.f32.xlu1 %v3648_v9 }
 0x3d3   : > { %v1614_v53 = vmul.f32 1.442695, %v1552_v2  ;;  %v1521_v59 = vpop.xlane.xlu0 %1520 }
 0x3d4   : > { %v1553_v50 = vsub.f32 %v3548_v55, %v1521_v59 }
 0x3d5   : > { %2535 = vpow2.f32 %v1614_v53  ;;  %v3652_v44 = vpop.eup %2523 }
 0x3d6   : > { %2537 = vpow2.f32 %v1612_v31  ;;  %v3654_v35 = vpop.eup %2525  ;;  %v1616_v48 = vmul.f32 1.442695, %v1553_v50  ;;  %1666 = vadd.xlane.f32.xlu1 %v3652_v44 }
 0x3d7   : > { %1672 = vadd.xlane.f32.xlu0 %v3654_v35 }
 0x3d8   : > { %2539 = vpow2.f32 %v1616_v48 }
 0x3d9   : > { %v3658_v51 = vpop.eup %2527 }
 0x3da   : > { %v3660_v29 = vpop.eup %2529  ;;  %1662 = vadd.xlane.f32.xlu1 %v3658_v51 }
 0x3db   : > { %1668 = vadd.xlane.f32.xlu0 %v3660_v29 }
 0x3dd   : > { %v3664_v55 = vpop.eup %2531 }
 0x3de   : > { %v3666_v6 = vpop.eup %2533 }
 0x3df   : > { %1674 = vadd.xlane.f32.xlu1 %v3666_v6  ;;  %1664 = vadd.xlane.f32.xlu0 %v3664_v55 }
 0x3e2   : > { %v3670_v23 = vpop.eup %2535 }
 0x3e3   : > { %v3672_v63 = vpop.eup %2537  ;;  %1678 = vadd.xlane.f32.xlu1 %v3670_v23 }
 0x3e4   : > { %1676 = vadd.xlane.f32.xlu0 %v3672_v63 }
 0x3e5   : > { %v3676_v36 = vpop.eup %2539 }
 0x3e8   : > { %1680 = vadd.xlane.f32.xlu0 %v3676_v36 }
 0x40b   : > { %v1623_v10 = vpop.xlane.xlu1 %1622 }
 0x40f   : > { %v1619_v25 = vpop.xlane.xlu1 %1618 }
 0x413   : > { %v1625_v8 = vpop.xlane.xlu0 %1624 }
 0x414   : > { %2541 = vrcp.f32 %v1625_v8 }
 0x415   : > { %v1631_v20 = vpop.xlane.xlu1 %1630  ;;  %2543 = vrcp.f32 %v1619_v25 }
 0x416   : > { %2545 = vrcp.f32 %v1623_v10 }
 0x417   : > { %v1621_v24 = vpop.xlane.xlu0 %1620 }
 0x418   : > { %2547 = vrcp.f32 %v1621_v24 }
 0x419   : > { %v1627_v7 = vpop.xlane.xlu1 %1626 }
 0x41b   : > { %v1633_v4 = vpop.xlane.xlu0 %1632 }
 0x41c   : > { %2549 = vrcp.f32 %v1633_v4 }
 0x41d   : > { %v1639_v61 = vpop.xlane.xlu1 %1638  ;;  %2551 = vrcp.f32 %v1627_v7 }
 0x41e   : > { %2553 = vrcp.f32 %v1631_v20 }
 0x41f   : > { %v1629_v34 = vpop.xlane.xlu0 %1628 }
 0x420   : > { %2555 = vrcp.f32 %v1629_v34 }
 0x421   : > { %v1635_v0 = vpop.xlane.xlu1 %1634  ;;  %v2542_v22 = vpop.eup %2541 }
 0x422   : > { %v2544_v45 = vpop.eup %2543  ;;  %v1717_v28 = vmul.f32 %v2542_v22, %v3569_v18 }
 0x423   : > { %v1641_v49 = vpop.xlane.xlu0 %1640  ;;  %v2546_v21 = vpop.eup %2545  ;;  %v1714_v2 = vmul.f32 %v2544_v45, %v3564_v32 }
 0x424   : > { %2557 = vrcp.f32 %v1641_v49  ;;  %v1716_v31 = vmul.f32 %v2546_v21, %v3559_v30 }
 0x425   : > { %v2548_v5 = vpop.eup %2547  ;;  %v1647_v14 = vpop.xlane.xlu1 %1646  ;;  %2559 = vrcp.f32 %v1635_v0 }
 0x426   : > { %v1715_v43 = vmul.f32 %v2548_v5, %v3577_v58  ;;  %2561 = vrcp.f32 %v1639_v61  ;;  %v1747_v50 = vpack.c.bf16 %v1717_v28, %v1716_v31 }
 0x427   : > { %v1637_v53 = vpop.xlane.xlu0 %1636 }
 0x428   : > { %2563 = vrcp.f32 %v1637_v53  ;;  %v1746_v59 = vpack.c.bf16 %v1715_v43, %v1714_v2 }
 0x429   : > { %v2550_v48 = vpop.eup %2549  ;;  %v1643_v25 = vpop.xlane.xlu1 %1642 }
 0x42a   : > { %2279 = vmatprep.mubr.bf16.mxu1 %v1746_v59  ;;  %v2552_v10 = vpop.eup %2551  ;;  %v1721_v32 = vmul.f32 %v2550_v48, %v3585_v38 }
 0x42b   : > { %2280 = vmatmul.mubr.bf16.vlgmr.msra.gmra.mxu1 %v1747_v50  ;;  %v1649_v8 = vpop.xlane.xlu0 %1648  ;;  %v2554_v20 = vpop.eup %2553  ;;  %v1718_v30 = vmul.f32 %v2552_v10, %v3581_v33 }
 0x42c   : > { %2335 = vmatpush3.bf16.msra.mxu1 %v3247_v1  ;;  %2565 = vrcp.f32 %v1649_v8  ;;  %v1720_v7 = vmul.f32 %v2554_v20, %v3573_v26 }
 0x42d   : > { %v2556_v18 = vpop.eup %2555  ;;  %2328 = vmatprep.subr.bf16.mxu1 %v3154_v3  ;;  %2567 = vrcp.f32 %v1643_v25 }
 0x42e   : > { %v1719_v58 = vmul.f32 %v2556_v18, %v3591_v27  ;;  %2569 = vrcp.f32 %v1647_v14  ;;  %v1749_v1 = vpack.c.bf16 %v1721_v32, %v1720_v7 }
 0x42f   : > { %v1645_v24 = vpop.xlane.xlu0 %1644 }
 0x430   : > { %2571 = vrcp.f32 %v1645_v24  ;;  %2336 = vmatpush3.bf16.msra.mxu1 %v3154_v3  ;;  %v1748_v4 = vpack.c.bf16 %v1719_v58, %v1718_v30 }
 0x431   : > { %2329 = vmatprep.subr.bf16.mxu1 %v3152_v40  ;;  %v2558_v61 = vpop.eup %2557 }
 0x432   : > { %2283 = vmatprep.mubr.bf16.mxu1 %v1748_v4  ;;  %v2560_v34 = vpop.eup %2559  ;;  %v1725_v27 = vmul.f32 %v2558_v61, %v3597_v54 }
 0x433   : > { %2284 = vmatmul.mubr.bf16.gmra.mxu1 %v1749_v1  ;;  %v2562_v38 = vpop.eup %2561  ;;  %v1722_v26 = vmul.f32 %v2560_v34, %v3594_v52 }
 0x434   : > { %2337 = vmatpush3.bf16.msra.mxu1 %v3152_v40  ;;  %v1724_v0 = vmul.f32 %v2562_v38, %v3588_v16 }
 0x435   : > { %v2564_v33 = vpop.eup %2563  ;;  %2330 = vmatprep.subr.bf16.mxu1 %v3150_v12 }
 0x436   : > { %v1723_v3 = vmul.f32 %v2564_v33, %v3603_v46  ;;  %v1751_v45 = vpack.c.bf16 %v1725_v27, %v1724_v0 }
 0x438   : > { %2338 = vmatpush3.bf16.msra.mxu1 %v3150_v12  ;;  %v1750_v22 = vpack.c.bf16 %v1723_v3, %v1722_v26 }
 0x439   : > { %2331 = vmatprep.subr.bf16.mxu1 %v3148_v56  ;;  %v2566_v49 = vpop.eup %2565 }
 0x43a   : > { %2287 = vmatprep.mubr.bf16.mxu1 %v1750_v22  ;;  %v2568_v40 = vpop.eup %2567  ;;  %v1729_v52 = vmul.f32 %v2566_v49, %v3609_v60 }
 0x43b   : > { %2288 = vmatmul.mubr.bf16.gmra.mxu1 %v1751_v45  ;;  %v2570_v21 = vpop.eup %2569  ;;  %v1726_v16 = vmul.f32 %v2568_v40, %v3606_v11 }
 0x43c   : > { %2339 = vmatpush3.bf16.msra.mxu1 %v3148_v56  ;;  %v1728_v46 = vmul.f32 %v2570_v21, %v3600_v17 }
 0x43d   : > { %v2572_v54 = vpop.eup %2571  ;;  %2332 = vmatprep.subr.bf16.mxu1 %v3140_v15 }
 0x43e   : > { %v1727_v12 = vmul.f32 %v2572_v54, %v3612_v41  ;;  %v1753_v14 = vpack.c.bf16 %v1729_v52, %v1728_v46 }
 0x440   : > { %2340 = vmatpush3.bf16.msra.mxu1 %v3140_v15  ;;  %v1752_v5 = vpack.c.bf16 %v1727_v12, %v1726_v16 }
 0x441   : > { %2333 = vmatprep.subr.bf16.mxu1 %v3126_v13 }
 0x442   : > { %2291 = vmatprep.mubr.bf16.mxu1 %v1752_v5 }
 0x443   : > { %2292 = vmatmul.mubr.bf16.gmra.mxu1 %v1753_v14 }
 0x444   : > { %2341 = vmatpush3.bf16.msra.mxu1 %v3126_v13 }
 0x445   : > { %2334 = vmatprep.subr.bf16.mxu1 %v3106_v62 }
 0x448   : > { %2342 = vmatpush3.bf16.msra.mxu1 %v3106_v62 }
 0x44b   : > { %v1655_v56 = vpop.xlane.xlu1 %1654 }
 0x44f   : > { %v1651_v11 = vpop.xlane.xlu1 %1650 }
 0x450   : > { %v1657_v60 = vpop.xlane.xlu0 %1656 }
 0x451   : > { %2573 = vrcp.f32 %v1657_v60 }
 0x452   : > { %2575 = vrcp.f32 %v1651_v11 }
 0x453   : > { %2577 = vrcp.f32 %v1655_v56 }
 0x454   : > { %v1653_v17 = vpop.xlane.xlu0 %1652 }
 0x455   : > { %2579 = vrcp.f32 %v1653_v17  ;;  %v1659_v15 = vpop.xlane.xlu1 %1658 }
 0x456   : > { %2581 = vrcp.f32 %v1659_v15 }
 0x459   : > { %v1661_v41 = vpop.xlane.xlu0 %1660 }
 0x45a   : > { %2583 = vrcp.f32 %v1661_v41 }
 0x45b   : > { %v1671_v28 = vpop.xlane.xlu1 %1670 }
 0x45e   : > { %v2574_v2 = vpop.eup %2573 }
 0x45f   : > { %v1667_v43 = vpop.xlane.xlu1 %1666  ;;  %v2576_v13 = vpop.eup %2575  ;;  %v1733_v62 = vmul.f32 %v2574_v2, %v3629_v37 }
 0x460   : > { %v1673_v53 = vpop.xlane.xlu0 %1672  ;;  %v2578_v31 = vpop.eup %2577  ;;  %v1730_v48 = vmul.f32 %v2576_v13, %v3627_v57 }
 0x461   : > { %2585 = vrcp.f32 %v1673_v53  ;;  %v1732_v8 = vmul.f32 %v2578_v31, %v3622_v39 }
 0x462   : > { %v2580_v59 = vpop.eup %2579  ;;  %2587 = vrcp.f32 %v1667_v43 }
 0x463   : > { %v1663_v50 = vpop.xlane.xlu1 %1662  ;;  %v1731_v10 = vmul.f32 %v2580_v59, %v3635_v19  ;;  %2589 = vrcp.f32 %v1671_v28  ;;  %v2582_v20 = vpop.eup %2581  ;;  %v1755_v32 = vpack.c.bf16 %v1733_v62, %v1732_v8 }
 0x464   : > { %v1669_v25 = vpop.xlane.xlu0 %1668  ;;  %v1734_v37 = vmul.f32 %v2582_v20, %v3637_v47 }
 0x465   : > { %2591 = vrcp.f32 %v1669_v25  ;;  %v1754_v18 = vpack.c.bf16 %v1731_v10, %v1730_v48 }
 0x466   : > { %2593 = vrcp.f32 %v1663_v50 }
 0x467   : > { %v2584_v30 = vpop.eup %2583  ;;  %2311 = vmatprep.mubr.bf16.mxu0 %v1754_v18 }
 0x468   : > { %v1675_v58 = vpop.xlane.xlu1 %1674  ;;  %v1665_v24 = vpop.xlane.xlu0 %1664  ;;  %2312 = vmatmul.mubr.bf16.vlgmr.msra.gmra.mxu0 %v1755_v32  ;;  %v1735_v57 = vmul.f32 %v2584_v30, %v3643_v42 }
 0x469   : > { %2595 = vrcp.f32 %v1665_v24 }
 0x46a   : > { %v1756_v19 = vpack.c.bf16 %v1735_v57, %v1734_v37  ;;  %2597 = vrcp.f32 %v1675_v58 }
 0x46c   : > { %v1679_v7 = vpop.xlane.xlu1 %1678  ;;  %2315 = vmatprep.mubr.bf16.mxu0 %v1756_v19 }
 0x46d   : > { %v1677_v4 = vpop.xlane.xlu0 %1676 }
 0x46e   : > { %2599 = vrcp.f32 %v1677_v4  ;;  %v2586_v39 = vpop.eup %2585 }
 0x46f   : > { %2601 = vrcp.f32 %v1679_v7  ;;  %v2588_v1 = vpop.eup %2587  ;;  %v1741_v33 = vmul.f32 %v2586_v39, %v3654_v35 }
 0x470   : > { %v2590_v34 = vpop.eup %2589  ;;  %v1738_v47 = vmul.f32 %v2588_v1, %v3652_v44 }
 0x471   : > { %v1681_v61 = vpop.xlane.xlu0 %1680  ;;  %v1740_v27 = vmul.f32 %v2590_v34, %v3648_v9 }
 0x472   : > { %2603 = vrcp.f32 %v1681_v61  ;;  %v2592_v38 = vpop.eup %2591 }
 0x473   : > { %v1739_v42 = vmul.f32 %v2592_v38, %v3660_v29  ;;  %v2594_v26 = vpop.eup %2593  ;;  %v1759_v0 = vpack.c.bf16 %v1741_v33, %v1740_v27 }
 0x474   : > { %v1736_v45 = vmul.f32 %v2594_v26, %v3658_v51 }
 0x475   : > { %v1758_v3 = vpack.c.bf16 %v1739_v42, %v1738_v47 }
 0x476   : > { %v2596_v22 = vpop.eup %2595 }
 0x477   : > { %2319 = vmatprep.mubr.bf16.mxu1 %v1758_v3  ;;  %v1737_v49 = vmul.f32 %v2596_v22, %v3664_v55  ;;  %v2598_v40 = vpop.eup %2597 }
 0x478   : > { %2320 = vmatmul.mubr.bf16.vlgmr.msra.gmra.mxu1 %v1759_v0  ;;  %v1742_v44 = vmul.f32 %v2598_v40, %v3666_v6 }
 0x479   : > { %v1757_v21 = vpack.c.bf16 %v1737_v49, %v1736_v45 }
 0x47b   : > { %v2600_v35 = vpop.eup %2599  ;;  %2316 = vmatmul.mubr.bf16.gmra.mxu0 %v1757_v21 }
 0x47c   : > { %v2602_v54 = vpop.eup %2601  ;;  %v1743_v9 = vmul.f32 %v2600_v35, %v3672_v63 }
 0x47d   : > { %v1744_v16 = vmul.f32 %v2602_v54, %v3670_v23 }
 0x47e   : > { %v1760_v52 = vpack.c.bf16 %v1743_v9, %v1742_v44 }
 0x47f   : > { %v2604_v29 = vpop.eup %2603 }
 0x480   : > { %v1745_v12 = vmul.f32 %v2604_v29, %v3676_v36  ;;  %2323 = vmatprep.mubr.bf16.mxu1 %v1760_v52 }
 0x482   : > { %v1761_v51 = vpack.c.bf16 %v1745_v12, %v1744_v16 }
 0x484   : > { %2324 = vmatmul.mubr.bf16.gmra.mxu1 %v1761_v51 }
 0x4eb   : > { %v2281_v55 = vpop.f32.mrf.mxu1 }
 0x4ec   : > { %1958 = vst.msk [vmem:[%s3731_s16 + $0x10] sm:$0xff] %vm3819_vm0, %v2281_v55 }
 0x4ed   : > { %v1796_v6 = vpop.f32.mrf.mxu1 }
 0x4ee   : > { %1956 = vst.msk [vmem:[%s3731_s16] sm:$0xff] %vm3820_vm1, %v1796_v6  ;;  %vm3835_vm1 = vmmov %vm3819_vm0 }
 0x4ef   : > { %v2282_v23 = vpop.f32.mrf.mxu1 }
 0x4f0   : > { %1959 = vst.msk [vmem:[%s3731_s16 + $0x18] sm:$0xff] %vm3821_vm2, %v2282_v23  ;;  %vm3836_vm2 = vmmov %vm3819_vm0 }
 0x4f1   : > { %v1799_v63 = vpop.f32.mrf.mxu1 }
 0x4f2   : > { %1957 = vst.msk [vmem:[%s3731_s16 + $0x8] sm:$0xff] %vm3822_vm3, %v1799_v63  ;;  %vm3837_vm3 = vmmov %vm3819_vm0 }
 0x4f3   : > { %v2285_v36 = vpop.f32.mrf.mxu1 }
 0x4f4   : > { %1962 = vst.msk [vmem:[%s3731_s16 + $0x30] sm:$0xff] %vm3823_vm4, %v2285_v36  ;;  %vm3838_vm4 = vmmov %vm3819_vm0 }
 0x4f5   : > { %v1812_v46 = vpop.f32.mrf.mxu1 }
 0x4f6   : > { %1960 = vst.msk [vmem:[%s3731_s16 + $0x20] sm:$0xff] %vm3824_vm5, %v1812_v46  ;;  %vm3839_vm5 = vmmov %vm3819_vm0 }
 0x4f7   : > { %v2286_v5 = vpop.f32.mrf.mxu1 }
 0x4f8   : > { %1963 = vst.msk [vmem:[%s3731_s16 + $0x38] sm:$0xff] %vm3825_vm6, %v2286_v5  ;;  %vm3840_vm6 = vmmov %vm3819_vm0 }
 0x4f9   : > { %v1815_v14 = vpop.f32.mrf.mxu1 }
 0x4fa   : > { %1961 = vst.msk [vmem:[%s3731_s16 + $0x28] sm:$0xff] %vm3826_vm7, %v1815_v14  ;;  %vm3841_vm7 = vmmov %vm3819_vm0 }
 0x4fb   : > { %v2289_v56 = vpop.f32.mrf.mxu1 }
 0x4fc   : > { %1966 = vst.msk [vmem:[%s3731_s16 + $0x50] sm:$0xff] %vm3827_vm8, %v2289_v56  ;;  %vm3842_vm8 = vmmov %vm3819_vm0 }
 0x4fd   : > { %v1828_v11 = vpop.f32.mrf.mxu1 }
 0x4fe   : > { %1964 = vst.msk [vmem:[%s3731_s16 + $0x40] sm:$0xff] %vm3828_vm9, %v1828_v11  ;;  %vm3843_vm9 = vmmov %vm3819_vm0 }
 0x4ff   : > { %v2290_v60 = vpop.f32.mrf.mxu1 }
 0x500   : > { %1967 = vst.msk [vmem:[%s3731_s16 + $0x58] sm:$0xff] %vm3829_vm10, %v2290_v60  ;;  %vm3844_vm10 = vmmov %vm3819_vm0 }
 0x501   : > { %v1831_v17 = vpop.f32.mrf.mxu1 }
 0x502   : > { %1965 = vst.msk [vmem:[%s3731_s16 + $0x48] sm:$0xff] %vm3830_vm11, %v1831_v17  ;;  %vm3845_vm11 = vmmov %vm3819_vm0 }
 0x503   : > { %v2293_v15 = vpop.f32.mrf.mxu1 }
 0x504   : > { %1970 = vst.msk [vmem:[%s3731_s16 + $0x70] sm:$0xff] %vm3831_vm12, %v2293_v15  ;;  %vm3846_vm12 = vmmov %vm3819_vm0 }
 0x505   : > { %v1844_v41 = vpop.f32.mrf.mxu1 }
 0x506   : > { %1968 = vst.msk [vmem:[%s3731_s16 + $0x60] sm:$0xff] %vm3832_vm13, %v1844_v41  ;;  %vm3847_vm13 = vmmov %vm3819_vm0 }
 0x507   : > { %v2294_v28 = vpop.f32.mrf.mxu1 }
 0x508   : > { %1971 = vst.msk [vmem:[%s3731_s16 + $0x78] sm:$0xff] %vm3833_vm14, %v2294_v28  ;;  %vm3848_vm14 = vmmov %vm3819_vm0 }
 0x509   : > { %v1847_v2 = vpop.f32.mrf.mxu1 }
 0x50a   : > { %1969 = vst.msk [vmem:[%s3731_s16 + $0x68] sm:$0xff] %vm3834_vm15, %v1847_v2  ;;  %vm3849_vm15 = vmmov %vm3819_vm0 }
 0x528   : > { %v2313_v43 = vpop.f32.mrf.mxu0 }
 0x529   : > { %1974 = vst.msk [vmem:[%s3731_s16 + $0x90] sm:$0xff] %vm3819_vm0, %v2313_v43 }
 0x52a   : > { %v1893_v13 = vpop.f32.mrf.mxu0 }
 0x52b   : > { %1972 = vst.msk [vmem:[%s3731_s16 + $0x80] sm:$0xff] %vm3835_vm1, %v1893_v13 }
 0x52c   : > { %v2314_v53 = vpop.f32.mrf.mxu0 }
 0x52d   : > { %1975 = vst.msk [vmem:[%s3731_s16 + $0x98] sm:$0xff] %vm3836_vm2, %v2314_v53 }
 0x52e   : > { %v1896_v31 = vpop.f32.mrf.mxu0 }
 0x52f   : > { %1973 = vst.msk [vmem:[%s3731_s16 + $0x88] sm:$0xff] %vm3837_vm3, %v1896_v31 }
 0x538   : > { %v2321_v59 = vpop.f32.mrf.mxu1 }
 0x539   : > { %1982 = vst.msk [vmem:[%s3731_s16 + $0xd0] sm:$0xff] %vm3838_vm4, %v2321_v59 }
 0x53a   : > { %v1925_v62 = vpop.f32.mrf.mxu1 }
 0x53b   : > { %1980 = vst.msk [vmem:[%s3731_s16 + $0xc0] sm:$0xff] %vm3839_vm5, %v1925_v62  ;;  %v2317_v50 = vpop.f32.mrf.mxu0 }
 0x53c   : > { %v2322_v48 = vpop.f32.mrf.mxu1  ;;  %1978 = vst.msk [vmem:[%s3731_s16 + $0xb0] sm:$0xff] %vm3840_vm6, %v2317_v50 }
 0x53d   : > { %1983 = vst.msk [vmem:[%s3731_s16 + $0xd8] sm:$0xff] %vm3841_vm7, %v2322_v48  ;;  %v1909_v10 = vpop.f32.mrf.mxu0 }
 0x53e   : > { %v1928_v25 = vpop.f32.mrf.mxu1  ;;  %1976 = vst.msk [vmem:[%s3731_s16 + $0xa0] sm:$0xff] %vm3842_vm8, %v1909_v10 }
 0x53f   : > { %1981 = vst.msk [vmem:[%s3731_s16 + $0xc8] sm:$0xff] %vm3843_vm9, %v1928_v25  ;;  %v2318_v8 = vpop.f32.mrf.mxu0 }
 0x540   : > { %1979 = vst.msk [vmem:[%s3731_s16 + $0xb8] sm:$0xff] %vm3844_vm10, %v2318_v8 }
 0x541   : > { %v1912_v20 = vpop.f32.mrf.mxu0 }
 0x542   : > { %1977 = vst.msk [vmem:[%s3731_s16 + $0xa8] sm:$0xff] %vm3845_vm11, %v1912_v20 }
 0x544   : > { %v2325_v18 = vpop.f32.mrf.mxu1 }
 0x545   : > { %1986 = vst.msk [vmem:[%s3731_s16 + $0xf0] sm:$0xff] %vm3846_vm12, %v2325_v18 }
 0x546   : > { %v1941_v32 = vpop.f32.mrf.mxu1 }
 0x547   : > { %1984 = vst.msk [vmem:[%s3731_s16 + $0xe0] sm:$0xff] %vm3847_vm13, %v1941_v32 }
 0x548   : > { %v2326_v30 = vpop.f32.mrf.mxu1 }
 0x549   : > { %1987 = vst.msk [vmem:[%s3731_s16 + $0xf8] sm:$0xff] %vm3848_vm14, %v2326_v30 }
 0x54a   : > { %v1944_v58 = vpop.f32.mrf.mxu1 }
 0x54b   : > { %1985 = vst.msk [vmem:[%s3731_s16 + $0xe8] sm:$0xff] %vm3849_vm15, %v1944_v58 }
 0x54c PF: > { %p12_p9 = scmp.ge.s32.totalorder %s2709_s14, 6   ;;  %s3850_s9 = smov %s2659_s10 }
 0x54d   : > { %s3851_s10 = smov %s2663_s11  ;;  %s3852_s11 = smov %s2719_s17 }
 0x54e   : > { %s3853_s12 = smov %s2709_s14  ;;  %14 = sbr.rel (!%p12_p9) target bundleno = 3 (0x3), region = 68 }
 0x553   :  { %2012 = vsyncpa [#allocation3], 1 }
 0x554   :  { %2014 = vsyncpa [#allocation3 + $0x1], 1 }

</bundles_post_ra>
